<compile_context>
chip_gen: v5e
topology: v5e:2x2
jax: 0.10.0
libtpu: 0.0.40
codegen_flags: <defaults>
</compile_context>

<pallas_src>
import functools
import math

import jax
import jax.numpy as jnp
from jax.experimental import pallas as pl
from jax.experimental.pallas import tpu as pltpu


_VMEM_LIMIT = 32 * 1024 * 1024  # safe on v5e/v6e (128 MiB phys) and v7x (64 MiB phys)


def _round_up(x, m):
    return (x + m - 1) // m * m


# ----------------------------- Tiled matmul (x @ W + b) -----------------------------

def _matmul_kernel(x_ref, w_ref, b_ref, o_ref, acc_ref):
    @pl.when(pl.program_id(2) == 0)
    def _():
        acc_ref[...] = jnp.zeros_like(acc_ref)

    acc_ref[...] += jnp.dot(x_ref[...], w_ref[...],
                            preferred_element_type=jnp.float32)

    @pl.when(pl.program_id(2) == pl.num_programs(2) - 1)
    def _():
        o_ref[...] = (acc_ref[...] + b_ref[...]).astype(o_ref.dtype)


def pallas_matmul(x, w, b, *, out_dtype=jnp.bfloat16, tm=256, tn=256, tk=512):
    """y = x @ w + b, tiled over (M, N, K). bf16 inputs, f32 accumulation."""
    M, K = x.shape
    _, N = w.shape
    bm = min(tm, _round_up(M, 8))
    bn = min(tn, _round_up(N, 128))
    bk = min(tk, _round_up(K, 128))
    Mp, Kp, Np = _round_up(M, bm), _round_up(K, bk), _round_up(N, bn)

    xb = x.astype(jnp.bfloat16)
    wb = w.astype(jnp.bfloat16)
    bf = b.astype(jnp.float32)
    if (Mp, Kp) != (M, K):
        xb = jnp.pad(xb, ((0, Mp - M), (0, Kp - K)))
    if (Kp, Np) != (K, N):
        wb = jnp.pad(wb, ((0, Kp - K), (0, Np - N)))
    if Np != N:
        bf = jnp.pad(bf, (0, Np - N))

    nm, nn, nk = Mp // bm, Np // bn, Kp // bk
    flops = 2 * Mp * Np * Kp
    bytes_accessed = (Mp * Kp * 2 + Kp * Np * 2 + Np * 4
                      + Mp * Np * jnp.dtype(out_dtype).itemsize)

    out = pl.pallas_call(
        _matmul_kernel,
        out_shape=jax.ShapeDtypeStruct((Mp, Np), out_dtype),
        grid=(nm, nn, nk),
        in_specs=[
            pl.BlockSpec((bm, bk), lambda i, j, k: (i, k)),
            pl.BlockSpec((bk, bn), lambda i, j, k: (k, j)),
            pl.BlockSpec((1, bn), lambda i, j, k: (0, j)),   # bias tiled with N
        ],
        out_specs=pl.BlockSpec((bm, bn), lambda i, j, k: (i, j)),
        scratch_shapes=[pltpu.VMEM((bm, bn), jnp.float32)],
        compiler_params=pltpu.CompilerParams(
            dimension_semantics=("parallel", "parallel", "arbitrary"),
            vmem_limit_bytes=_VMEM_LIMIT),
        cost_estimate=pl.CostEstimate(flops=flops, transcendentals=0,
                                      bytes_accessed=bytes_accessed),
    )(xb, wb, bf.reshape(1, Np))

    if (Mp, Np) != (M, N):
        out = out[:M, :N]
    return out


# ----------------------------- Fused FFN: relu(x@W1+b1)@W2+b2 -----------------------------

def _ffn_kernel(x_ref, w1_ref, b1_ref, w2_ref, b2_ref, o_ref, acc_ref):
    h_idx = pl.program_id(1)

    @pl.when(h_idx == 0)
    def _():
        acc_ref[...] = jnp.zeros_like(acc_ref)

    h = jnp.dot(x_ref[...], w1_ref[...], preferred_element_type=jnp.float32)
    h = jnp.maximum(h + b1_ref[...], 0.0)
    acc_ref[...] += jnp.dot(h.astype(jnp.bfloat16), w2_ref[...],
                            preferred_element_type=jnp.float32)

    @pl.when(h_idx == pl.num_programs(1) - 1)
    def _():
        o_ref[...] = (acc_ref[...] + b2_ref[...]).astype(o_ref.dtype)


def feed_forward(x, p):
    """Fused FFN: the (M, d_hidden) intermediate never touches HBM."""
    B, S, D = x.shape
    M = B * S
    H = p["w1"].shape[1]
    bm = min(256, _round_up(M, 8))
    bh = min(512, _round_up(H, 128))
    Mp, Hp = _round_up(M, bm), _round_up(H, bh)

    x2 = x.reshape(M, D).astype(jnp.bfloat16)
    if Mp != M:
        x2 = jnp.pad(x2, ((0, Mp - M), (0, 0)))
    w1, b1, w2, b2 = p["w1"], p["b1"], p["w2"], p["b2"]
    if Hp != H:
        w1 = jnp.pad(w1, ((0, 0), (0, Hp - H)))
        b1 = jnp.pad(b1, (0, Hp - H))
        w2 = jnp.pad(w2, ((0, Hp - H), (0, 0)))

    flops = 4 * Mp * D * Hp
    bytes_accessed = Mp * D * 2 + D * Hp * 2 + Hp * D * 2 + Mp * D * 2

    out = pl.pallas_call(
        _ffn_kernel,
        out_shape=jax.ShapeDtypeStruct((Mp, D), jnp.bfloat16),
        grid=(Mp // bm, Hp // bh),
        in_specs=[
            pl.BlockSpec((bm, D), lambda i, h: (i, 0)),
            pl.BlockSpec((D, bh), lambda i, h: (0, h)),
            pl.BlockSpec((1, bh), lambda i, h: (0, h)),
            pl.BlockSpec((bh, D), lambda i, h: (h, 0)),
            pl.BlockSpec((1, D), lambda i, h: (0, 0)),
        ],
        out_specs=pl.BlockSpec((bm, D), lambda i, h: (i, 0)),
        scratch_shapes=[pltpu.VMEM((bm, D), jnp.float32)],
        compiler_params=pltpu.CompilerParams(
            dimension_semantics=("parallel", "arbitrary"),
            vmem_limit_bytes=_VMEM_LIMIT),
        cost_estimate=pl.CostEstimate(flops=flops, transcendentals=0,
                                      bytes_accessed=bytes_accessed),
    )(x2, w1, b1.reshape(1, Hp).astype(jnp.float32),
      w2, b2.reshape(1, D).astype(jnp.float32))

    if Mp != M:
        out = out[:M]
    return out.reshape(B, S, D)


# ----------------------------- LayerNorm(x + residual) -----------------------------

def _ln_kernel(x_ref, res_ref, g_ref, b_ref, o_ref, *, eps):
    x = x_ref[...].astype(jnp.float32) + res_ref[...].astype(jnp.float32)
    mean = jnp.mean(x, axis=-1, keepdims=True)
    xc = x - mean
    var = jnp.mean(xc * xc, axis=-1, keepdims=True)
    y = xc * jax.lax.rsqrt(var + eps)
    o_ref[...] = (y * g_ref[...] + b_ref[...]).astype(o_ref.dtype)


def layer_norm_residual(x, res, p, eps=1e-12):
    B, S, D = x.shape
    M = B * S
    bm = min(512, _round_up(M, 8))
    Mp = _round_up(M, bm)
    x2 = x.reshape(M, D)
    r2 = res.reshape(M, D)
    if Mp != M:
        x2 = jnp.pad(x2, ((0, Mp - M), (0, 0)))
        r2 = jnp.pad(r2, ((0, Mp - M), (0, 0)))
    out = pl.pallas_call(
        functools.partial(_ln_kernel, eps=eps),
        out_shape=jax.ShapeDtypeStruct((Mp, D), jnp.bfloat16),
        grid=(Mp // bm,),
        in_specs=[pl.BlockSpec((bm, D), lambda i: (i, 0)),
                  pl.BlockSpec((bm, D), lambda i: (i, 0)),
                  pl.BlockSpec((1, D), lambda i: (0, 0)),
                  pl.BlockSpec((1, D), lambda i: (0, 0))],
        out_specs=pl.BlockSpec((bm, D), lambda i: (i, 0)),
        compiler_params=pltpu.CompilerParams(
            dimension_semantics=("parallel",),
            vmem_limit_bytes=_VMEM_LIMIT),
    )(x2, r2, p["g"].reshape(1, D), p["b"].reshape(1, D))
    if Mp != M:
        out = out[:M]
    return out.reshape(B, S, D)


# ----------------------------- Attention kernels -----------------------------

def _mask2d(m, Sq, Sk, causal):
    # m: (1, Sk) key-pad mask  or  (Sq, 1) query-pad mask; 0 -> masked.
    keep = jnp.broadcast_to(m, (Sq, Sk)) > 0.0
    if causal:
        row = jax.lax.broadcasted_iota(jnp.int32, (Sq, Sk), 0)
        col = jax.lax.broadcasted_iota(jnp.int32, (Sq, Sk), 1)
        keep = jnp.logical_and(keep, row >= col)
    return keep


def _attn_core(q, k, v, mask2d, *, n_head, scale):
    # q: (Sq, D), k/v: (Sk, D) bf16.  All heads processed per grid step
    # (static lane slices), output kept lane-dense (Sq, D).
    Sq, D = q.shape
    dh = D // n_head
    outs = []
    for h in range(n_head):
        lo = h * dh
        qh = q[:, lo:lo + dh]
        kh = k[:, lo:lo + dh]
        vh = v[:, lo:lo + dh]
        s = jax.lax.dot_general(qh, kh, (((1,), (1,)), ((), ())),
                                preferred_element_type=jnp.float32) * scale
        s = jnp.where(mask2d, s, -10000.0)      # masked_fill(mask == 0, -10000)
        s = s - jnp.max(s, axis=-1, keepdims=True)
        p = jnp.exp(s)
        p = p * pl.reciprocal(jnp.sum(p, axis=-1, keepdims=True), approx=True)
        outs.append(jnp.dot(p.astype(vh.dtype), vh,
                            preferred_element_type=jnp.float32))
    return jnp.concatenate(outs, axis=-1)       # (Sq, D) lane-dense


def _self_attn_kernel(qkv_ref, m_ref, o_ref, *, n_head, scale, causal):
    S, D = o_ref.shape[1], o_ref.shape[2]
    x = qkv_ref[0]                              # (S, 3D) bf16
    q = x[:, 0:D]
    k = x[:, D:2 * D]
    v = x[:, 2 * D:3 * D]
    mask2d = _mask2d(m_ref[0], S, S, causal)
    o_ref[0] = _attn_core(q, k, v, mask2d,
                          n_head=n_head, scale=scale).astype(o_ref.dtype)


def _cross_attn_kernel(q_ref, kv_ref, m_ref, o_ref, *, n_head, scale):
    Sq, D = o_ref.shape[1], o_ref.shape[2]
    Sk = kv_ref.shape[1]
    q = q_ref[0]                                # (Sq, D)
    kv = kv_ref[0]                              # (Sk, 2D)
    k = kv[:, 0:D]
    v = kv[:, D:2 * D]
    mask2d = _mask2d(m_ref[0], Sq, Sk, causal=False)
    o_ref[0] = _attn_core(q, k, v, mask2d,
                          n_head=n_head, scale=scale).astype(o_ref.dtype)


def pallas_self_attention(qkv, mask, n_head, causal):
    B, S, D3 = qkv.shape
    D = D3 // 3
    scale = 1.0 / math.sqrt(D // n_head)
    Mq, Mk = mask.shape[1], mask.shape[2]
    return pl.pallas_call(
        functools.partial(_self_attn_kernel, n_head=n_head, scale=scale,
                          causal=causal),
        out_shape=jax.ShapeDtypeStruct((B, S, D), jnp.bfloat16),
        grid=(B,),
        in_specs=[
            pl.BlockSpec((1, S, D3), lambda b: (b, 0, 0)),
            pl.BlockSpec((1, Mq, Mk), lambda b: (b, 0, 0)),
        ],
        out_specs=pl.BlockSpec((1, S, D), lambda b: (b, 0, 0)),
        compiler_params=pltpu.CompilerParams(
            dimension_semantics=("parallel",),
            vmem_limit_bytes=_VMEM_LIMIT),
    )(qkv, mask)


def pallas_cross_attention(q, kv, mask, n_head):
    B, Sq, D = q.shape
    Sk = kv.shape[1]
    scale = 1.0 / math.sqrt(D // n_head)
    Mq, Mk = mask.shape[1], mask.shape[2]
    return pl.pallas_call(
        functools.partial(_cross_attn_kernel, n_head=n_head, scale=scale),
        out_shape=jax.ShapeDtypeStruct((B, Sq, D), jnp.bfloat16),
        grid=(B,),
        in_specs=[
            pl.BlockSpec((1, Sq, D), lambda b: (b, 0, 0)),
            pl.BlockSpec((1, Sk, 2 * D), lambda b: (b, 0, 0)),
            pl.BlockSpec((1, Mq, Mk), lambda b: (b, 0, 0)),
        ],
        out_specs=pl.BlockSpec((1, Sq, D), lambda b: (b, 0, 0)),
        compiler_params=pltpu.CompilerParams(
            dimension_semantics=("parallel",),
            vmem_limit_bytes=_VMEM_LIMIT),
    )(q, kv, mask)


# ----------------------------- Model pieces -----------------------------

def mha_self(x, mask, p, n_head, causal):
    B, S, D = x.shape
    qkv = pallas_matmul(x.reshape(B * S, D), p["wqkv"], p["bqkv"]).reshape(B, S, 3 * D)
    o = pallas_self_attention(qkv, mask, n_head, causal)
    return pallas_matmul(o.reshape(B * S, D), p["wo"], p["bo"]).reshape(B, S, D)


def mha_cross(x_q, x_kv, mask, p, n_head):
    B, Sq, D = x_q.shape
    Sk = x_kv.shape[1]
    q = pallas_matmul(x_q.reshape(B * Sq, D), p["wq"], p["bq"]).reshape(B, Sq, D)
    kv = pallas_matmul(x_kv.reshape(B * Sk, D), p["wkv"], p["bkv"]).reshape(B, Sk, 2 * D)
    o = pallas_cross_attention(q, kv, mask, n_head)
    return pallas_matmul(o.reshape(B * Sq, D), p["wo"], p["bo"]).reshape(B, Sq, D)


def embed(tokens, table, pos_enc):
    S = tokens.shape[1]
    x = jnp.take(table, tokens, axis=0) + pos_enc[:S][None, :, :]
    return x.astype(jnp.bfloat16)


def transformer_forward(params, src, trg, cfg):
    B, Ss = src.shape
    St = trg.shape[1]
    n_head = cfg["n_head"]

    # Compact masks (no n_head replication, no (B,S,S) causal stream):
    #   encoder/cross: key-padding (B, 1, Ss); decoder self: query-padding
    #   (B, St, 1) with the causal triangle generated in-kernel via iota.
    src_keep = (src != cfg["src_pad_idx"]).astype(jnp.float32)
    trg_keep = (trg != cfg["trg_pad_idx"]).astype(jnp.float32)
    enc_mask = src_keep[:, None, :]      # (B, 1, Ss)
    dec_mask = trg_keep[:, :, None]      # (B, St, 1)
    cross_mask = enc_mask

    pe = params["pos_enc"]

    # ---- encoder ----
    x = embed(src, params["enc_emb"], pe)
    for blk in params["enc_blocks"]:
        a = mha_self(x, enc_mask, blk["attn"], n_head, causal=False)
        x = layer_norm_residual(a, x, blk["ln1"])
        f = feed_forward(x, blk["ffn"])
        x = layer_norm_residual(f, x, blk["ln2"])
    enc_out = x

    # ---- decoder ----
    y = embed(trg, params["dec_emb"], pe)
    for blk in params["dec_blocks"]:
        a = mha_self(y, dec_mask, blk["self_attn"], n_head, causal=True)
        y = layer_norm_residual(a, y, blk["ln1"])
        c = mha_cross(y, enc_out, cross_mask, blk["cross_attn"], n_head)
        y = layer_norm_residual(c, y, blk["ln2"])
        f = feed_forward(y, blk["ffn"])
        y = layer_norm_residual(f, y, blk["ln3"])

    B_, St_, D = y.shape
    logits = pallas_matmul(y.reshape(B * St, D), params["out_w"], params["out_b"],
                           out_dtype=jnp.float32)
    return logits.reshape(B, St, -1)


# ----------------------------- Parameter init -----------------------------

def sinusoidal_pos_encoding(max_len, d_model):
    pos = jnp.arange(max_len, dtype=jnp.float32)[:, None]
    i2 = jnp.arange(0, d_model, 2, dtype=jnp.float32)[None, :]
    angle = pos / jnp.power(10000.0, i2 / d_model)
    pe = jnp.zeros((max_len, d_model), jnp.float32)
    pe = pe.at[:, 0::2].set(jnp.sin(angle))
    pe = pe.at[:, 1::2].set(jnp.cos(angle))
    return pe


def _rand_w(key, din, dout):
    # Weights stored in bf16 (matmul input dtype); biases stay f32.
    return (jax.random.normal(key, (din, dout), jnp.float32) * 0.02).astype(jnp.bfloat16)


def init_self_mha(key, d):
    ks = jax.random.split(key, 4)
    wq, wk, wv, wo = (_rand_w(k, d, d) for k in ks)
    return {"wqkv": jnp.concatenate([wq, wk, wv], axis=1),
            "bqkv": jnp.zeros((3 * d,), jnp.float32),
            "wo": wo, "bo": jnp.zeros((d,), jnp.float32)}


def init_cross_mha(key, d):
    ks = jax.random.split(key, 4)
    wq, wk, wv, wo = (_rand_w(k, d, d) for k in ks)
    return {"wq": wq, "bq": jnp.zeros((d,), jnp.float32),
            "wkv": jnp.concatenate([wk, wv], axis=1),
            "bkv": jnp.zeros((2 * d,), jnp.float32),
            "wo": wo, "bo": jnp.zeros((d,), jnp.float32)}


def init_ln(d):
    return {"g": jnp.ones((d,), jnp.float32), "b": jnp.zeros((d,), jnp.float32)}


def init_ffn(key, d, h):
    k1, k2 = jax.random.split(key)
    return {"w1": _rand_w(k1, d, h), "b1": jnp.zeros((h,), jnp.float32),
            "w2": _rand_w(k2, h, d), "b2": jnp.zeros((d,), jnp.float32)}


def init_params(key, cfg):
    d, h, nb = cfg["d_model"], cfg["d_hidden"], cfg["n_blocks"]
    keys = jax.random.split(key, 8)
    enc_emb = jax.random.normal(keys[0], (cfg["enc_voc_size"], d), jnp.float32) * 0.02
    dec_emb = jax.random.normal(keys[1], (cfg["dec_voc_size"], d), jnp.float32) * 0.02
    # TokenEmbedding uses padding_idx -> zero that embedding row
    enc_emb = enc_emb.at[cfg["src_pad_idx"]].set(0.0)
    dec_emb = dec_emb.at[cfg["trg_pad_idx"]].set(0.0)

    enc_blocks = []
    for i in range(nb):
        k = jax.random.fold_in(keys[2], i)
        ka, kf = jax.random.split(k)
        enc_blocks.append({"attn": init_self_mha(ka, d), "ln1": init_ln(d),
                           "ffn": init_ffn(kf, d, h), "ln2": init_ln(d)})

    dec_blocks = []
    for i in range(nb):
        k = jax.random.fold_in(keys[3], i)
        ks_, kc, kf = jax.random.split(k, 3)
        dec_blocks.append({"self_attn": init_self_mha(ks_, d), "ln1": init_ln(d),
                           "cross_attn": init_cross_mha(kc, d), "ln2": init_ln(d),
                           "ffn": init_ffn(kf, d, h), "ln3": init_ln(d)})

    ow = _rand_w(keys[4], d, cfg["dec_voc_size"])
    return {
        "enc_emb": enc_emb,
        "dec_emb": dec_emb,
        "pos_enc": sinusoidal_pos_encoding(cfg["max_length"], d),
        "enc_blocks": enc_blocks,
        "dec_blocks": dec_blocks,
        "out_w": ow,
        "out_b": jnp.zeros((cfg["dec_voc_size"],), jnp.float32),
    }


# ----------------------------- Main -----------------------------

if __name__ == "__main__":
    cfg = dict(
        src_pad_idx=1, trg_pad_idx=1, trg_sos_index=2,
        enc_voc_size=32, dec_voc_size=32,
        d_model=32, n_head=4, max_length=16,
        d_hidden=64, n_blocks=2, drop_prop=0.1,
    )

    key = jax.random.PRNGKey(0)
    kp, ks, kt = jax.random.split(key, 3)
    params = init_params(kp, cfg)

    B, Ss, St = 2, 8, 8
    src = jax.random.randint(ks, (B, Ss), 0, cfg["enc_voc_size"], dtype=jnp.int32)
    trg = jax.random.randint(kt, (B, St), 0, cfg["dec_voc_size"], dtype=jnp.int32)

    fwd = jax.jit(lambda p, s, t: transformer_forward(p, s, t, cfg))
    out = jax.block_until_ready(fwd(params, src, trg))

    assert out.shape == (B, St, cfg["dec_voc_size"])
    assert bool(jnp.all(jnp.isfinite(out)))
    print("KERNEL_OK")
</pallas_src>

<mosaic_0001>
module attributes {stable_mosaic.version = 11 : i64} {
  func.func @_self_attn_kernel(%arg0: i32, %arg1: memref<1x8x96xbf16, #tpu.memory_space<vmem>>, %arg2: memref<1x1x8xf32, #tpu.memory_space<vmem>>, %arg3: memref<1x8x32xbf16, #tpu.memory_space<vmem>>) attributes {dimension_semantics = [#tpu.dimension_semantics<parallel>], iteration_bounds = array<i64: 2>, scalar_prefetch = 0 : i64, scratch_operands = 0 : i64, tpu.core_type = #tpu.core_type<tc>, window_params = [{transform_indices = @transform_0, window_bounds = array<i64: 1, 8, 96>}, {transform_indices = @transform_1, window_bounds = array<i64: 1, 1, 8>}, {transform_indices = @transform_2, window_bounds = array<i64: 1, 8, 32>}]} {
    %c0 = arith.constant 0 : index
    %c0_0 = arith.constant 0 : index
    %c0_1 = arith.constant 0 : index
    %0 = vector.load %arg1[%c0, %c0_0, %c0_1] : memref<1x8x96xbf16, #tpu.memory_space<vmem>>, vector<1x8x96xbf16>
    %1 = vector.shape_cast %0 : vector<1x8x96xbf16> to vector<8x96xbf16>
    %2 = vector.extract_strided_slice %1 {offsets = [0, 0], sizes = [8, 32], strides = [1, 1]} : vector<8x96xbf16> to vector<8x32xbf16>
    %3 = vector.extract_strided_slice %1 {offsets = [0, 32], sizes = [8, 32], strides = [1, 1]} : vector<8x96xbf16> to vector<8x32xbf16>
    %4 = vector.extract_strided_slice %1 {offsets = [0, 64], sizes = [8, 32], strides = [1, 1]} : vector<8x96xbf16> to vector<8x32xbf16>
    %c0_2 = arith.constant 0 : index
    %c0_3 = arith.constant 0 : index
    %c0_4 = arith.constant 0 : index
    %5 = vector.load %arg2[%c0_2, %c0_3, %c0_4] : memref<1x1x8xf32, #tpu.memory_space<vmem>>, vector<1x1x8xf32>
    %6 = vector.shape_cast %5 : vector<1x1x8xf32> to vector<1x8xf32>
    %7 = vector.shape_cast %6 : vector<1x8xf32> to vector<1x8xf32>
    %8 = vector.broadcast %7 : vector<1x8xf32> to vector<8x8xf32>
    %cst = arith.constant 0.000000e+00 : f32
    %9 = vector.broadcast %cst : f32 to vector<8x8xf32>
    %10 = arith.cmpf ogt, %8, %9 : vector<8x8xf32>
    %11 = vector.extract_strided_slice %2 {offsets = [0, 0], sizes = [8, 8], strides = [1, 1]} : vector<8x32xbf16> to vector<8x8xbf16>
    %12 = vector.extract_strided_slice %3 {offsets = [0, 0], sizes = [8, 8], strides = [1, 1]} : vector<8x32xbf16> to vector<8x8xbf16>
    %13 = vector.extract_strided_slice %4 {offsets = [0, 0], sizes = [8, 8], strides = [1, 1]} : vector<8x32xbf16> to vector<8x8xbf16>
    %cst_5 = arith.constant dense<0.000000e+00> : vector<8x8xf32>
    %14 = tpu.matmul %11, %12, %cst_5 {dimension_numbers = #tpu.dot_dimension_numbers<[1], [1], [0], [0], [0, 0, 1, 0], [], []>} : vector<8x8xbf16>, vector<8x8xbf16>, vector<8x8xf32> -> vector<8x8xf32>
    %cst_6 = arith.constant 0.353553385 : f32
    %15 = vector.broadcast %cst_6 : f32 to vector<8x8xf32>
    %16 = arith.mulf %14, %15 : vector<8x8xf32>
    %cst_7 = arith.constant -1.000000e+04 : f32
    %17 = vector.broadcast %cst_7 : f32 to vector<8x8xf32>
    %18 = arith.select %10, %16, %17 : vector<8x8xi1>, vector<8x8xf32>
    %cst_8 = arith.constant dense<0xFF800000> : vector<8xf32>
    %19 = vector.multi_reduction <maximumf>, %18, %cst_8 [1] : vector<8x8xf32> to vector<8xf32>
    %20 = vector.shape_cast %19 : vector<8xf32> to vector<8x1xf32>
    %21 = vector.broadcast %20 : vector<8x1xf32> to vector<8x8xf32>
    %22 = arith.subf %18, %21 : vector<8x8xf32>
    %23 = math.exp %22 : vector<8x8xf32>
    %cst_9 = arith.constant dense<0.000000e+00> : vector<8xf32>
    %24 = vector.multi_reduction <add>, %23, %cst_9 [1] : vector<8x8xf32> to vector<8xf32>
    %25 = vector.shape_cast %24 : vector<8xf32> to vector<8x1xf32>
    %26 = tpu.reciprocal %25 {approx = true} : vector<8x1xf32> -> vector<8x1xf32>
    %27 = vector.broadcast %26 : vector<8x1xf32> to vector<8x8xf32>
    %28 = arith.mulf %23, %27 : vector<8x8xf32>
    %29 = arith.truncf %28 : vector<8x8xf32> to vector<8x8xbf16>
    %cst_10 = arith.constant dense<0.000000e+00> : vector<8x8xf32>
    %30 = tpu.matmul %29, %13, %cst_10 {dimension_numbers = #tpu.dot_dimension_numbers<[1], [0], [0], [1], [0, 0, 1, 1], [], []>} : vector<8x8xbf16>, vector<8x8xbf16>, vector<8x8xf32> -> vector<8x8xf32>
    %31 = vector.extract_strided_slice %2 {offsets = [0, 8], sizes = [8, 8], strides = [1, 1]} : vector<8x32xbf16> to vector<8x8xbf16>
    %32 = vector.extract_strided_slice %3 {offsets = [0, 8], sizes = [8, 8], strides = [1, 1]} : vector<8x32xbf16> to vector<8x8xbf16>
    %33 = vector.extract_strided_slice %4 {offsets = [0, 8], sizes = [8, 8], strides = [1, 1]} : vector<8x32xbf16> to vector<8x8xbf16>
    %cst_11 = arith.constant dense<0.000000e+00> : vector<8x8xf32>
    %34 = tpu.matmul %31, %32, %cst_11 {dimension_numbers = #tpu.dot_dimension_numbers<[1], [1], [0], [0], [0, 0, 1, 0], [], []>} : vector<8x8xbf16>, vector<8x8xbf16>, vector<8x8xf32> -> vector<8x8xf32>
    %cst_12 = arith.constant 0.353553385 : f32
    %35 = vector.broadcast %cst_12 : f32 to vector<8x8xf32>
    %36 = arith.mulf %34, %35 : vector<8x8xf32>
    %cst_13 = arith.constant -1.000000e+04 : f32
    %37 = vector.broadcast %cst_13 : f32 to vector<8x8xf32>
    %38 = arith.select %10, %36, %37 : vector<8x8xi1>, vector<8x8xf32>
    %cst_14 = arith.constant dense<0xFF800000> : vector<8xf32>
    %39 = vector.multi_reduction <maximumf>, %38, %cst_14 [1] : vector<8x8xf32> to vector<8xf32>
    %40 = vector.shape_cast %39 : vector<8xf32> to vector<8x1xf32>
    %41 = vector.broadcast %40 : vector<8x1xf32> to vector<8x8xf32>
    %42 = arith.subf %38, %41 : vector<8x8xf32>
    %43 = math.exp %42 : vector<8x8xf32>
    %cst_15 = arith.constant dense<0.000000e+00> : vector<8xf32>
    %44 = vector.multi_reduction <add>, %43, %cst_15 [1] : vector<8x8xf32> to vector<8xf32>
    %45 = vector.shape_cast %44 : vector<8xf32> to vector<8x1xf32>
    %46 = tpu.reciprocal %45 {approx = true} : vector<8x1xf32> -> vector<8x1xf32>
    %47 = vector.broadcast %46 : vector<8x1xf32> to vector<8x8xf32>
    %48 = arith.mulf %43, %47 : vector<8x8xf32>
    %49 = arith.truncf %48 : vector<8x8xf32> to vector<8x8xbf16>
    %cst_16 = arith.constant dense<0.000000e+00> : vector<8x8xf32>
    %50 = tpu.matmul %49, %33, %cst_16 {dimension_numbers = #tpu.dot_dimension_numbers<[1], [0], [0], [1], [0, 0, 1, 1], [], []>} : vector<8x8xbf16>, vector<8x8xbf16>, vector<8x8xf32> -> vector<8x8xf32>
    %51 = vector.extract_strided_slice %2 {offsets = [0, 16], sizes = [8, 8], strides = [1, 1]} : vector<8x32xbf16> to vector<8x8xbf16>
    %52 = vector.extract_strided_slice %3 {offsets = [0, 16], sizes = [8, 8], strides = [1, 1]} : vector<8x32xbf16> to vector<8x8xbf16>
    %53 = vector.extract_strided_slice %4 {offsets = [0, 16], sizes = [8, 8], strides = [1, 1]} : vector<8x32xbf16> to vector<8x8xbf16>
    %cst_17 = arith.constant dense<0.000000e+00> : vector<8x8xf32>
    %54 = tpu.matmul %51, %52, %cst_17 {dimension_numbers = #tpu.dot_dimension_numbers<[1], [1], [0], [0], [0, 0, 1, 0], [], []>} : vector<8x8xbf16>, vector<8x8xbf16>, vector<8x8xf32> -> vector<8x8xf32>
    %cst_18 = arith.constant 0.353553385 : f32
    %55 = vector.broadcast %cst_18 : f32 to vector<8x8xf32>
    %56 = arith.mulf %54, %55 : vector<8x8xf32>
    %cst_19 = arith.constant -1.000000e+04 : f32
    %57 = vector.broadcast %cst_19 : f32 to vector<8x8xf32>
    %58 = arith.select %10, %56, %57 : vector<8x8xi1>, vector<8x8xf32>
    %cst_20 = arith.constant dense<0xFF800000> : vector<8xf32>
    %59 = vector.multi_reduction <maximumf>, %58, %cst_20 [1] : vector<8x8xf32> to vector<8xf32>
    %60 = vector.shape_cast %59 : vector<8xf32> to vector<8x1xf32>
    %61 = vector.broadcast %60 : vector<8x1xf32> to vector<8x8xf32>
    %62 = arith.subf %58, %61 : vector<8x8xf32>
    %63 = math.exp %62 : vector<8x8xf32>
    %cst_21 = arith.constant dense<0.000000e+00> : vector<8xf32>
    %64 = vector.multi_reduction <add>, %63, %cst_21 [1] : vector<8x8xf32> to vector<8xf32>
    %65 = vector.shape_cast %64 : vector<8xf32> to vector<8x1xf32>
    %66 = tpu.reciprocal %65 {approx = true} : vector<8x1xf32> -> vector<8x1xf32>
    %67 = vector.broadcast %66 : vector<8x1xf32> to vector<8x8xf32>
    %68 = arith.mulf %63, %67 : vector<8x8xf32>
    %69 = arith.truncf %68 : vector<8x8xf32> to vector<8x8xbf16>
    %cst_22 = arith.constant dense<0.000000e+00> : vector<8x8xf32>
    %70 = tpu.matmul %69, %53, %cst_22 {dimension_numbers = #tpu.dot_dimension_numbers<[1], [0], [0], [1], [0, 0, 1, 1], [], []>} : vector<8x8xbf16>, vector<8x8xbf16>, vector<8x8xf32> -> vector<8x8xf32>
    %71 = vector.extract_strided_slice %2 {offsets = [0, 24], sizes = [8, 8], strides = [1, 1]} : vector<8x32xbf16> to vector<8x8xbf16>
    %72 = vector.extract_strided_slice %3 {offsets = [0, 24], sizes = [8, 8], strides = [1, 1]} : vector<8x32xbf16> to vector<8x8xbf16>
    %73 = vector.extract_strided_slice %4 {offsets = [0, 24], sizes = [8, 8], strides = [1, 1]} : vector<8x32xbf16> to vector<8x8xbf16>
    %cst_23 = arith.constant dense<0.000000e+00> : vector<8x8xf32>
    %74 = tpu.matmul %71, %72, %cst_23 {dimension_numbers = #tpu.dot_dimension_numbers<[1], [1], [0], [0], [0, 0, 1, 0], [], []>} : vector<8x8xbf16>, vector<8x8xbf16>, vector<8x8xf32> -> vector<8x8xf32>
    %cst_24 = arith.constant 0.353553385 : f32
    %75 = vector.broadcast %cst_24 : f32 to vector<8x8xf32>
    %76 = arith.mulf %74, %75 : vector<8x8xf32>
    %cst_25 = arith.constant -1.000000e+04 : f32
    %77 = vector.broadcast %cst_25 : f32 to vector<8x8xf32>
    %78 = arith.select %10, %76, %77 : vector<8x8xi1>, vector<8x8xf32>
    %cst_26 = arith.constant dense<0xFF800000> : vector<8xf32>
    %79 = vector.multi_reduction <maximumf>, %78, %cst_26 [1] : vector<8x8xf32> to vector<8xf32>
    %80 = vector.shape_cast %79 : vector<8xf32> to vector<8x1xf32>
    %81 = vector.broadcast %80 : vector<8x1xf32> to vector<8x8xf32>
    %82 = arith.subf %78, %81 : vector<8x8xf32>
    %83 = math.exp %82 : vector<8x8xf32>
    %cst_27 = arith.constant dense<0.000000e+00> : vector<8xf32>
    %84 = vector.multi_reduction <add>, %83, %cst_27 [1] : vector<8x8xf32> to vector<8xf32>
    %85 = vector.shape_cast %84 : vector<8xf32> to vector<8x1xf32>
    %86 = tpu.reciprocal %85 {approx = true} : vector<8x1xf32> -> vector<8x1xf32>
    %87 = vector.broadcast %86 : vector<8x1xf32> to vector<8x8xf32>
    %88 = arith.mulf %83, %87 : vector<8x8xf32>
    %89 = arith.truncf %88 : vector<8x8xf32> to vector<8x8xbf16>
    %cst_28 = arith.constant dense<0.000000e+00> : vector<8x8xf32>
    %90 = tpu.matmul %89, %73, %cst_28 {dimension_numbers = #tpu.dot_dimension_numbers<[1], [0], [0], [1], [0, 0, 1, 1], [], []>} : vector<8x8xbf16>, vector<8x8xbf16>, vector<8x8xf32> -> vector<8x8xf32>
    %91 = tpu.concatenate %30, %50, %70, %90 in 1 : vector<8x8xf32>, vector<8x8xf32>, vector<8x8xf32>, vector<8x8xf32> -> vector<8x32xf32>
    %92 = arith.truncf %91 : vector<8x32xf32> to vector<8x32xbf16>
    %c0_29 = arith.constant 0 : index
    %c0_30 = arith.constant 0 : index
    %c0_31 = arith.constant 0 : index
    %93 = vector.load %arg3[%c0_29, %c0_30, %c0_31] : memref<1x8x32xbf16, #tpu.memory_space<vmem>>, vector<1x8x32xbf16>
    %94 = vector.shape_cast %93 : vector<1x8x32xbf16> to vector<8x32xbf16>
    %95 = vector.shape_cast %92 : vector<8x32xbf16> to vector<1x8x32xbf16>
    tpu.vector_store %arg3[%c0_29, %c0_30, %c0_31], %95 {strides = array<i32>} : memref<1x8x32xbf16, #tpu.memory_space<vmem>>, vector<1x8x32xbf16>,
    return
  }
  func.func @transform_0(%arg0: i32) -> (i32, i32, i32) {
    %c0_i32 = arith.constant 0 : i32
    %c0_i32_0 = arith.constant 0 : i32
    %c0_i32_1 = arith.constant 0 : i32
    return %arg0, %c0_i32, %c0_i32_0 : i32, i32, i32
  }
  func.func @transform_1(%arg0: i32) -> (i32, i32, i32) {
    %c0_i32 = arith.constant 0 : i32
    %c0_i32_0 = arith.constant 0 : i32
    %c0_i32_1 = arith.constant 0 : i32
    return %arg0, %c0_i32, %c0_i32_0 : i32, i32, i32
  }
  func.func @transform_2(%arg0: i32) -> (i32, i32, i32) {
    %c0_i32 = arith.constant 0 : i32
    %c0_i32_0 = arith.constant 0 : i32
    %c0_i32_1 = arith.constant 0 : i32
    return %arg0, %c0_i32, %c0_i32_0 : i32, i32, i32
  }
}

module attributes {stable_mosaic.version = 11 : i64} {
  func.func @_matmul_kernel(%arg0: i32, %arg1: i32, %arg2: i32, %arg3: memref<16x128xbf16, #tpu.memory_space<vmem>>, %arg4: memref<128x128xbf16, #tpu.memory_space<vmem>>, %arg5: memref<1x128xf32, #tpu.memory_space<vmem>>, %arg6: memref<16x128xbf16, #tpu.memory_space<vmem>>, %arg7: memref<16x128xf32, #tpu.memory_space<vmem>>) attributes {dimension_semantics = [#tpu.dimension_semantics<parallel>, #tpu.dimension_semantics<parallel>, #tpu.dimension_semantics<arbitrary>], iteration_bounds = array<i64: 1, 1, 1>, scalar_prefetch = 0 : i64, scratch_operands = 1 : i64, tpu.core_type = #tpu.core_type<tc>, window_params = [{transform_indices = @transform_0, window_bounds = array<i64: 16, 128>}, {transform_indices = @transform_1, window_bounds = array<i64: 128, 128>}, {transform_indices = @transform_2, window_bounds = array<i64: 1, 128>}, {transform_indices = @transform_3, window_bounds = array<i64: 16, 128>}]} {
    %c0_i32 = arith.constant 0 : i32
    %0 = arith.cmpi eq, %arg2, %c0_i32 : i32
    %1 = arith.extui %0 : i1 to i32
    %c0_i32_0 = arith.constant 0 : i32
    %2 = arith.cmpi ne, %1, %c0_i32_0 : i32
    scf.if %2 {
      %cst_10 = arith.constant 0.000000e+00 : f32
      %12 = vector.broadcast %cst_10 : f32 to vector<16x128xf32>
      %c0_11 = arith.constant 0 : index
      %c0_12 = arith.constant 0 : index
      %13 = vector.load %arg7[%c0_11, %c0_12] : memref<16x128xf32, #tpu.memory_space<vmem>>, vector<16x128xf32>
      tpu.vector_store %arg7[%c0_11, %c0_12], %12 {strides = array<i32>} : memref<16x128xf32, #tpu.memory_space<vmem>>, vector<16x128xf32>,
    } else {
    }
    %c0 = arith.constant 0 : index
    %c0_1 = arith.constant 0 : index
    %3 = vector.load %arg7[%c0, %c0_1] : memref<16x128xf32, #tpu.memory_space<vmem>>, vector<16x128xf32>
    %c0_2 = arith.constant 0 : index
    %c0_3 = arith.constant 0 : index
    %4 = vector.load %arg3[%c0_2, %c0_3] : memref<16x128xbf16, #tpu.memory_space<vmem>>, vector<16x128xbf16>
    %c0_4 = arith.constant 0 : index
    %c0_5 = arith.constant 0 : index
    %5 = vector.load %arg4[%c0_4, %c0_5] : memref<128x128xbf16, #tpu.memory_space<vmem>>, vector<128x128xbf16>
    %cst = arith.constant dense<0.000000e+00> : vector<16x128xf32>
    %6 = tpu.matmul %4, %5, %cst {dimension_numbers = #tpu.dot_dimension_numbers<[1], [0], [0], [1], [0, 0, 1, 1], [], []>} : vector<16x128xbf16>, vector<128x128xbf16>, vector<16x128xf32> -> vector<16x128xf32>
    %7 = arith.addf %3, %6 : vector<16x128xf32>
    %c0_6 = arith.constant 0 : index
    %c0_7 = arith.constant 0 : index
    %8 = vector.load %arg7[%c0_6, %c0_7] : memref<16x128xf32, #tpu.memory_space<vmem>>, vector<16x128xf32>
    tpu.vector_store %arg7[%c0_6, %c0_7], %7 {strides = array<i32>} : memref<16x128xf32, #tpu.memory_space<vmem>>, vector<16x128xf32>,
    %c0_i32_8 = arith.constant 0 : i32
    %9 = arith.cmpi eq, %arg2, %c0_i32_8 : i32
    %10 = arith.extui %9 : i1 to i32
    %c0_i32_9 = arith.constant 0 : i32
    %11 = arith.cmpi ne, %10, %c0_i32_9 : i32
    scf.if %11 {
      %c0_10 = arith.constant 0 : index
      %c0_11 = arith.constant 0 : index
      %12 = vector.load %arg7[%c0_10, %c0_11] : memref<16x128xf32, #tpu.memory_space<vmem>>, vector<16x128xf32>
      %c0_12 = arith.constant 0 : index
      %c0_13 = arith.constant 0 : index
      %13 = vector.load %arg5[%c0_12, %c0_13] : memref<1x128xf32, #tpu.memory_space<vmem>>, vector<1x128xf32>
      %14 = vector.broadcast %13 : vector<1x128xf32> to vector<16x128xf32>
      %15 = arith.addf %12, %14 : vector<16x128xf32>
      %16 = arith.truncf %15 : vector<16x128xf32> to vector<16x128xbf16>
      %c0_14 = arith.constant 0 : index
      %c0_15 = arith.constant 0 : index
      %17 = vector.load %arg6[%c0_14, %c0_15] : memref<16x128xbf16, #tpu.memory_space<vmem>>, vector<16x128xbf16>
      tpu.vector_store %arg6[%c0_14, %c0_15], %16 {strides = array<i32>} : memref<16x128xbf16, #tpu.memory_space<vmem>>, vector<16x128xbf16>,
    } else {
    }
    return
  }
  func.func @transform_0(%arg0: i32, %arg1: i32, %arg2: i32) -> (i32, i32) {
    %c0_i32 = arith.constant 0 : i32
    return %arg0, %arg2 : i32, i32
  }
  func.func @transform_1(%arg0: i32, %arg1: i32, %arg2: i32) -> (i32, i32) {
    %c0_i32 = arith.constant 0 : i32
    return %arg2, %arg1 : i32, i32
  }
  func.func @transform_2(%arg0: i32, %arg1: i32, %arg2: i32) -> (i32, i32) {
    %c0_i32 = arith.constant 0 : i32
    %c0_i32_0 = arith.constant 0 : i32
    return %c0_i32, %arg1 : i32, i32
  }
  func.func @transform_3(%arg0: i32, %arg1: i32, %arg2: i32) -> (i32, i32) {
    %c0_i32 = arith.constant 0 : i32
    return %arg0, %arg1 : i32, i32
  }
}

module attributes {stable_mosaic.version = 11 : i64} {
  func.func @_ln_kernel(%arg0: i32, %arg1: memref<16x32xbf16, #tpu.memory_space<vmem>>, %arg2: memref<16x32xbf16, #tpu.memory_space<vmem>>, %arg3: memref<1x32xf32, #tpu.memory_space<vmem>>, %arg4: memref<1x32xf32, #tpu.memory_space<vmem>>, %arg5: memref<16x32xbf16, #tpu.memory_space<vmem>>) attributes {dimension_semantics = [#tpu.dimension_semantics<parallel>], iteration_bounds = array<i64: 1>, scalar_prefetch = 0 : i64, scratch_operands = 0 : i64, tpu.core_type = #tpu.core_type<tc>, window_params = [{transform_indices = @transform_0, window_bounds = array<i64: 16, 32>}, {transform_indices = @transform_1, window_bounds = array<i64: 16, 32>}, {pipeline_mode = #tpu.pipeline_mode<synchronous>, transform_indices = @transform_2, window_bounds = array<i64: 1, 32>}, {pipeline_mode = #tpu.pipeline_mode<synchronous>, transform_indices = @transform_3, window_bounds = array<i64: 1, 32>}, {transform_indices = @transform_4, window_bounds = array<i64: 16, 32>}]} {
    %c0 = arith.constant 0 : index
    %c0_0 = arith.constant 0 : index
    %0 = vector.load %arg1[%c0, %c0_0] : memref<16x32xbf16, #tpu.memory_space<vmem>>, vector<16x32xbf16>
    %1 = arith.extf %0 : vector<16x32xbf16> to vector<16x32xf32>
    %c0_1 = arith.constant 0 : index
    %c0_2 = arith.constant 0 : index
    %2 = vector.load %arg2[%c0_1, %c0_2] : memref<16x32xbf16, #tpu.memory_space<vmem>>, vector<16x32xbf16>
    %3 = arith.extf %2 : vector<16x32xbf16> to vector<16x32xf32>
    %4 = arith.addf %1, %3 : vector<16x32xf32>
    %cst = arith.constant dense<0.000000e+00> : vector<16xf32>
    %5 = vector.multi_reduction <add>, %4, %cst [1] : vector<16x32xf32> to vector<16xf32>
    %6 = vector.shape_cast %5 : vector<16xf32> to vector<16x1xf32>
    %cst_3 = arith.constant 3.200000e+01 : f32
    %7 = vector.broadcast %cst_3 : f32 to vector<16x1xf32>
    %8 = arith.divf %6, %7 : vector<16x1xf32>
    %9 = vector.broadcast %8 : vector<16x1xf32> to vector<16x32xf32>
    %10 = arith.subf %4, %9 : vector<16x32xf32>
    %11 = arith.mulf %10, %10 : vector<16x32xf32>
    %cst_4 = arith.constant dense<0.000000e+00> : vector<16xf32>
    %12 = vector.multi_reduction <add>, %11, %cst_4 [1] : vector<16x32xf32> to vector<16xf32>
    %13 = vector.shape_cast %12 : vector<16xf32> to vector<16x1xf32>
    %cst_5 = arith.constant 3.200000e+01 : f32
    %14 = vector.broadcast %cst_5 : f32 to vector<16x1xf32>
    %15 = arith.divf %13, %14 : vector<16x1xf32>
    %cst_6 = arith.constant 9.99999996E-13 : f32
    %16 = vector.broadcast %cst_6 : f32 to vector<16x1xf32>
    %17 = arith.addf %15, %16 : vector<16x1xf32>
    %18 = math.rsqrt %17 : vector<16x1xf32>
    %19 = vector.broadcast %18 : vector<16x1xf32> to vector<16x32xf32>
    %20 = arith.mulf %10, %19 : vector<16x32xf32>
    %c0_7 = arith.constant 0 : index
    %c0_8 = arith.constant 0 : index
    %21 = vector.load %arg3[%c0_7, %c0_8] : memref<1x32xf32, #tpu.memory_space<vmem>>, vector<1x32xf32>
    %22 = vector.broadcast %21 : vector<1x32xf32> to vector<16x32xf32>
    %23 = arith.mulf %20, %22 : vector<16x32xf32>
    %c0_9 = arith.constant 0 : index
    %c0_10 = arith.constant 0 : index
    %24 = vector.load %arg4[%c0_9, %c0_10] : memref<1x32xf32, #tpu.memory_space<vmem>>, vector<1x32xf32>
    %25 = vector.broadcast %24 : vector<1x32xf32> to vector<16x32xf32>
    %26 = arith.addf %23, %25 : vector<16x32xf32>
    %27 = arith.truncf %26 : vector<16x32xf32> to vector<16x32xbf16>
    %c0_11 = arith.constant 0 : index
    %c0_12 = arith.constant 0 : index
    %28 = vector.load %arg5[%c0_11, %c0_12] : memref<16x32xbf16, #tpu.memory_space<vmem>>, vector<16x32xbf16>
    tpu.vector_store %arg5[%c0_11, %c0_12], %27 {strides = array<i32>} : memref<16x32xbf16, #tpu.memory_space<vmem>>, vector<16x32xbf16>,
    return
  }
  func.func @transform_0(%arg0: i32) -> (i32, i32) {
    %c0_i32 = arith.constant 0 : i32
    %c0_i32_0 = arith.constant 0 : i32
    return %arg0, %c0_i32 : i32, i32
  }
  func.func @transform_1(%arg0: i32) -> (i32, i32) {
    %c0_i32 = arith.constant 0 : i32
    %c0_i32_0 = arith.constant 0 : i32
    return %arg0, %c0_i32 : i32, i32
  }
  func.func @transform_2(%arg0: i32) -> (i32, i32) {
    %c0_i32 = arith.constant 0 : i32
    %c0_i32_0 = arith.constant 0 : i32
    %c0_i32_1 = arith.constant 0 : i32
    return %c0_i32, %c0_i32_0 : i32, i32
  }
  func.func @transform_3(%arg0: i32) -> (i32, i32) {
    %c0_i32 = arith.constant 0 : i32
    %c0_i32_0 = arith.constant 0 : i32
    %c0_i32_1 = arith.constant 0 : i32
    return %c0_i32, %c0_i32_0 : i32, i32
  }
  func.func @transform_4(%arg0: i32) -> (i32, i32) {
    %c0_i32 = arith.constant 0 : i32
    %c0_i32_0 = arith.constant 0 : i32
    return %arg0, %c0_i32 : i32, i32
  }
}

module attributes {stable_mosaic.version = 11 : i64} {
  func.func @_ffn_kernel(%arg0: i32, %arg1: i32, %arg2: memref<16x32xbf16, #tpu.memory_space<vmem>>, %arg3: memref<32x128xbf16, #tpu.memory_space<vmem>>, %arg4: memref<1x128xf32, #tpu.memory_space<vmem>>, %arg5: memref<128x32xbf16, #tpu.memory_space<vmem>>, %arg6: memref<1x32xf32, #tpu.memory_space<vmem>>, %arg7: memref<16x32xbf16, #tpu.memory_space<vmem>>, %arg8: memref<16x32xf32, #tpu.memory_space<vmem>>) attributes {dimension_semantics = [#tpu.dimension_semantics<parallel>, #tpu.dimension_semantics<arbitrary>], iteration_bounds = array<i64: 1, 1>, scalar_prefetch = 0 : i64, scratch_operands = 1 : i64, tpu.core_type = #tpu.core_type<tc>, window_params = [{transform_indices = @transform_0, window_bounds = array<i64: 16, 32>}, {transform_indices = @transform_1, window_bounds = array<i64: 32, 128>}, {transform_indices = @transform_2, window_bounds = array<i64: 1, 128>}, {transform_indices = @transform_3, window_bounds = array<i64: 128, 32>}, {pipeline_mode = #tpu.pipeline_mode<synchronous>, transform_indices = @transform_4, window_bounds = array<i64: 1, 32>}, {transform_indices = @transform_5, window_bounds = array<i64: 16, 32>}]} {
    %c0_i32 = arith.constant 0 : i32
    %0 = arith.cmpi eq, %arg1, %c0_i32 : i32
    %1 = arith.extui %0 : i1 to i32
    %c0_i32_0 = arith.constant 0 : i32
    %2 = arith.cmpi ne, %1, %c0_i32_0 : i32
    scf.if %2 {
      %cst_16 = arith.constant 0.000000e+00 : f32
      %20 = vector.broadcast %cst_16 : f32 to vector<16x32xf32>
      %c0_17 = arith.constant 0 : index
      %c0_18 = arith.constant 0 : index
      %21 = vector.load %arg8[%c0_17, %c0_18] : memref<16x32xf32, #tpu.memory_space<vmem>>, vector<16x32xf32>
      tpu.vector_store %arg8[%c0_17, %c0_18], %20 {strides = array<i32>} : memref<16x32xf32, #tpu.memory_space<vmem>>, vector<16x32xf32>,
    } else {
    }
    %c0 = arith.constant 0 : index
    %c0_1 = arith.constant 0 : index
    %3 = vector.load %arg2[%c0, %c0_1] : memref<16x32xbf16, #tpu.memory_space<vmem>>, vector<16x32xbf16>
    %c0_2 = arith.constant 0 : index
    %c0_3 = arith.constant 0 : index
    %4 = vector.load %arg3[%c0_2, %c0_3] : memref<32x128xbf16, #tpu.memory_space<vmem>>, vector<32x128xbf16>
    %cst = arith.constant dense<0.000000e+00> : vector<16x128xf32>
    %5 = tpu.matmul %3, %4, %cst {dimension_numbers = #tpu.dot_dimension_numbers<[1], [0], [0], [1], [0, 0, 1, 1], [], []>} : vector<16x32xbf16>, vector<32x128xbf16>, vector<16x128xf32> -> vector<16x128xf32>
    %c0_4 = arith.constant 0 : index
    %c0_5 = arith.constant 0 : index
    %6 = vector.load %arg4[%c0_4, %c0_5] : memref<1x128xf32, #tpu.memory_space<vmem>>, vector<1x128xf32>
    %7 = vector.broadcast %6 : vector<1x128xf32> to vector<16x128xf32>
    %8 = arith.addf %5, %7 : vector<16x128xf32>
    %cst_6 = arith.constant 0.000000e+00 : f32
    %9 = vector.broadcast %cst_6 : f32 to vector<16x128xf32>
    %10 = arith.maximumf %8, %9 : vector<16x128xf32>
    %c0_7 = arith.constant 0 : index
    %c0_8 = arith.constant 0 : index
    %11 = vector.load %arg8[%c0_7, %c0_8] : memref<16x32xf32, #tpu.memory_space<vmem>>, vector<16x32xf32>
    %12 = arith.truncf %10 : vector<16x128xf32> to vector<16x128xbf16>
    %c0_9 = arith.constant 0 : index
    %c0_10 = arith.constant 0 : index
    %13 = vector.load %arg5[%c0_9, %c0_10] : memref<128x32xbf16, #tpu.memory_space<vmem>>, vector<128x32xbf16>
    %cst_11 = arith.constant dense<0.000000e+00> : vector<16x32xf32>
    %14 = tpu.matmul %12, %13, %cst_11 {dimension_numbers = #tpu.dot_dimension_numbers<[1], [0], [0], [1], [0, 0, 1, 1], [], []>} : vector<16x128xbf16>, vector<128x32xbf16>, vector<16x32xf32> -> vector<16x32xf32>
    %15 = arith.addf %11, %14 : vector<16x32xf32>
    %c0_12 = arith.constant 0 : index
    %c0_13 = arith.constant 0 : index
    %16 = vector.load %arg8[%c0_12, %c0_13] : memref<16x32xf32, #tpu.memory_space<vmem>>, vector<16x32xf32>
    tpu.vector_store %arg8[%c0_12, %c0_13], %15 {strides = array<i32>} : memref<16x32xf32, #tpu.memory_space<vmem>>, vector<16x32xf32>,
    %c0_i32_14 = arith.constant 0 : i32
    %17 = arith.cmpi eq, %arg1, %c0_i32_14 : i32
    %18 = arith.extui %17 : i1 to i32
    %c0_i32_15 = arith.constant 0 : i32
    %19 = arith.cmpi ne, %18, %c0_i32_15 : i32
    scf.if %19 {
      %c0_16 = arith.constant 0 : index
      %c0_17 = arith.constant 0 : index
      %20 = vector.load %arg8[%c0_16, %c0_17] : memref<16x32xf32, #tpu.memory_space<vmem>>, vector<16x32xf32>
      %c0_18 = arith.constant 0 : index
      %c0_19 = arith.constant 0 : index
      %21 = vector.load %arg6[%c0_18, %c0_19] : memref<1x32xf32, #tpu.memory_space<vmem>>, vector<1x32xf32>
      %22 = vector.broadcast %21 : vector<1x32xf32> to vector<16x32xf32>
      %23 = arith.addf %20, %22 : vector<16x32xf32>
      %24 = arith.truncf %23 : vector<16x32xf32> to vector<16x32xbf16>
      %c0_20 = arith.constant 0 : index
      %c0_21 = arith.constant 0 : index
      %25 = vector.load %arg7[%c0_20, %c0_21] : memref<16x32xbf16, #tpu.memory_space<vmem>>, vector<16x32xbf16>
      tpu.vector_store %arg7[%c0_20, %c0_21], %24 {strides = array<i32>} : memref<16x32xbf16, #tpu.memory_space<vmem>>, vector<16x32xbf16>,
    } else {
    }
    return
  }
  func.func @transform_0(%arg0: i32, %arg1: i32) -> (i32, i32) {
    %c0_i32 = arith.constant 0 : i32
    %c0_i32_0 = arith.constant 0 : i32
    return %arg0, %c0_i32 : i32, i32
  }
  func.func @transform_1(%arg0: i32, %arg1: i32) -> (i32, i32) {
    %c0_i32 = arith.constant 0 : i32
    %c0_i32_0 = arith.constant 0 : i32
    return %c0_i32, %arg1 : i32, i32
  }
  func.func @transform_2(%arg0: i32, %arg1: i32) -> (i32, i32) {
    %c0_i32 = arith.constant 0 : i32
    %c0_i32_0 = arith.constant 0 : i32
    return %c0_i32, %arg1 : i32, i32
  }
  func.func @transform_3(%arg0: i32, %arg1: i32) -> (i32, i32) {
    %c0_i32 = arith.constant 0 : i32
    %c0_i32_0 = arith.constant 0 : i32
    return %arg1, %c0_i32 : i32, i32
  }
  func.func @transform_4(%arg0: i32, %arg1: i32) -> (i32, i32) {
    %c0_i32 = arith.constant 0 : i32
    %c0_i32_0 = arith.constant 0 : i32
    %c0_i32_1 = arith.constant 0 : i32
    return %c0_i32, %c0_i32_0 : i32, i32
  }
  func.func @transform_5(%arg0: i32, %arg1: i32) -> (i32, i32) {
    %c0_i32 = arith.constant 0 : i32
    %c0_i32_0 = arith.constant 0 : i32
    return %arg0, %c0_i32 : i32, i32
  }
}

module attributes {stable_mosaic.version = 11 : i64} {
  func.func @_self_attn_kernel(%arg0: i32, %arg1: memref<1x8x96xbf16, #tpu.memory_space<vmem>>, %arg2: memref<1x8x1xf32, #tpu.memory_space<vmem>>, %arg3: memref<1x8x32xbf16, #tpu.memory_space<vmem>>) attributes {dimension_semantics = [#tpu.dimension_semantics<parallel>], iteration_bounds = array<i64: 2>, scalar_prefetch = 0 : i64, scratch_operands = 0 : i64, tpu.core_type = #tpu.core_type<tc>, window_params = [{transform_indices = @transform_0, window_bounds = array<i64: 1, 8, 96>}, {transform_indices = @transform_1, window_bounds = array<i64: 1, 8, 1>}, {transform_indices = @transform_2, window_bounds = array<i64: 1, 8, 32>}]} {
    %c0 = arith.constant 0 : index
    %c0_0 = arith.constant 0 : index
    %c0_1 = arith.constant 0 : index
    %0 = vector.load %arg1[%c0, %c0_0, %c0_1] : memref<1x8x96xbf16, #tpu.memory_space<vmem>>, vector<1x8x96xbf16>
    %1 = vector.shape_cast %0 : vector<1x8x96xbf16> to vector<8x96xbf16>
    %2 = vector.extract_strided_slice %1 {offsets = [0, 0], sizes = [8, 32], strides = [1, 1]} : vector<8x96xbf16> to vector<8x32xbf16>
    %3 = vector.extract_strided_slice %1 {offsets = [0, 32], sizes = [8, 32], strides = [1, 1]} : vector<8x96xbf16> to vector<8x32xbf16>
    %4 = vector.extract_strided_slice %1 {offsets = [0, 64], sizes = [8, 32], strides = [1, 1]} : vector<8x96xbf16> to vector<8x32xbf16>
    %c0_2 = arith.constant 0 : index
    %c0_3 = arith.constant 0 : index
    %c0_4 = arith.constant 0 : index
    %5 = vector.load %arg2[%c0_2, %c0_3, %c0_4] : memref<1x8x1xf32, #tpu.memory_space<vmem>>, vector<1x8x1xf32>
    %6 = vector.shape_cast %5 : vector<1x8x1xf32> to vector<8x1xf32>
    %7 = vector.shape_cast %6 : vector<8x1xf32> to vector<8x1xf32>
    %8 = vector.broadcast %7 : vector<8x1xf32> to vector<8x8xf32>
    %cst = arith.constant 0.000000e+00 : f32
    %9 = vector.broadcast %cst : f32 to vector<8x8xf32>
    %10 = arith.cmpf ogt, %8, %9 : vector<8x8xf32>
    %11 = tpu.iota {dimensions = array<i32: 0>} : vector<8x8xi32>
    %12 = tpu.iota {dimensions = array<i32: 1>} : vector<8x8xi32>
    %13 = arith.cmpi sge, %11, %12 : vector<8x8xi32>
    %14 = arith.andi %10, %13 : vector<8x8xi1>
    %15 = vector.extract_strided_slice %2 {offsets = [0, 0], sizes = [8, 8], strides = [1, 1]} : vector<8x32xbf16> to vector<8x8xbf16>
    %16 = vector.extract_strided_slice %3 {offsets = [0, 0], sizes = [8, 8], strides = [1, 1]} : vector<8x32xbf16> to vector<8x8xbf16>
    %17 = vector.extract_strided_slice %4 {offsets = [0, 0], sizes = [8, 8], strides = [1, 1]} : vector<8x32xbf16> to vector<8x8xbf16>
    %cst_5 = arith.constant dense<0.000000e+00> : vector<8x8xf32>
    %18 = tpu.matmul %15, %16, %cst_5 {dimension_numbers = #tpu.dot_dimension_numbers<[1], [1], [0], [0], [0, 0, 1, 0], [], []>} : vector<8x8xbf16>, vector<8x8xbf16>, vector<8x8xf32> -> vector<8x8xf32>
    %cst_6 = arith.constant 0.353553385 : f32
    %19 = vector.broadcast %cst_6 : f32 to vector<8x8xf32>
    %20 = arith.mulf %18, %19 : vector<8x8xf32>
    %cst_7 = arith.constant -1.000000e+04 : f32
    %21 = vector.broadcast %cst_7 : f32 to vector<8x8xf32>
    %22 = arith.select %14, %20, %21 : vector<8x8xi1>, vector<8x8xf32>
    %cst_8 = arith.constant dense<0xFF800000> : vector<8xf32>
    %23 = vector.multi_reduction <maximumf>, %22, %cst_8 [1] : vector<8x8xf32> to vector<8xf32>
    %24 = vector.shape_cast %23 : vector<8xf32> to vector<8x1xf32>
    %25 = vector.broadcast %24 : vector<8x1xf32> to vector<8x8xf32>
    %26 = arith.subf %22, %25 : vector<8x8xf32>
    %27 = math.exp %26 : vector<8x8xf32>
    %cst_9 = arith.constant dense<0.000000e+00> : vector<8xf32>
    %28 = vector.multi_reduction <add>, %27, %cst_9 [1] : vector<8x8xf32> to vector<8xf32>
    %29 = vector.shape_cast %28 : vector<8xf32> to vector<8x1xf32>
    %30 = tpu.reciprocal %29 {approx = true} : vector<8x1xf32> -> vector<8x1xf32>
    %31 = vector.broadcast %30 : vector<8x1xf32> to vector<8x8xf32>
    %32 = arith.mulf %27, %31 : vector<8x8xf32>
    %33 = arith.truncf %32 : vector<8x8xf32> to vector<8x8xbf16>
    %cst_10 = arith.constant dense<0.000000e+00> : vector<8x8xf32>
    %34 = tpu.matmul %33, %17, %cst_10 {dimension_numbers = #tpu.dot_dimension_numbers<[1], [0], [0], [1], [0, 0, 1, 1], [], []>} : vector<8x8xbf16>, vector<8x8xbf16>, vector<8x8xf32> -> vector<8x8xf32>
    %35 = vector.extract_strided_slice %2 {offsets = [0, 8], sizes = [8, 8], strides = [1, 1]} : vector<8x32xbf16> to vector<8x8xbf16>
    %36 = vector.extract_strided_slice %3 {offsets = [0, 8], sizes = [8, 8], strides = [1, 1]} : vector<8x32xbf16> to vector<8x8xbf16>
    %37 = vector.extract_strided_slice %4 {offsets = [0, 8], sizes = [8, 8], strides = [1, 1]} : vector<8x32xbf16> to vector<8x8xbf16>
    %cst_11 = arith.constant dense<0.000000e+00> : vector<8x8xf32>
    %38 = tpu.matmul %35, %36, %cst_11 {dimension_numbers = #tpu.dot_dimension_numbers<[1], [1], [0], [0], [0, 0, 1, 0], [], []>} : vector<8x8xbf16>, vector<8x8xbf16>, vector<8x8xf32> -> vector<8x8xf32>
    %cst_12 = arith.constant 0.353553385 : f32
    %39 = vector.broadcast %cst_12 : f32 to vector<8x8xf32>
    %40 = arith.mulf %38, %39 : vector<8x8xf32>
    %cst_13 = arith.constant -1.000000e+04 : f32
    %41 = vector.broadcast %cst_13 : f32 to vector<8x8xf32>
    %42 = arith.select %14, %40, %41 : vector<8x8xi1>, vector<8x8xf32>
    %cst_14 = arith.constant dense<0xFF800000> : vector<8xf32>
    %43 = vector.multi_reduction <maximumf>, %42, %cst_14 [1] : vector<8x8xf32> to vector<8xf32>
    %44 = vector.shape_cast %43 : vector<8xf32> to vector<8x1xf32>
    %45 = vector.broadcast %44 : vector<8x1xf32> to vector<8x8xf32>
    %46 = arith.subf %42, %45 : vector<8x8xf32>
    %47 = math.exp %46 : vector<8x8xf32>
    %cst_15 = arith.constant dense<0.000000e+00> : vector<8xf32>
    %48 = vector.multi_reduction <add>, %47, %cst_15 [1] : vector<8x8xf32> to vector<8xf32>
    %49 = vector.shape_cast %48 : vector<8xf32> to vector<8x1xf32>
    %50 = tpu.reciprocal %49 {approx = true} : vector<8x1xf32> -> vector<8x1xf32>
    %51 = vector.broadcast %50 : vector<8x1xf32> to vector<8x8xf32>
    %52 = arith.mulf %47, %51 : vector<8x8xf32>
    %53 = arith.truncf %52 : vector<8x8xf32> to vector<8x8xbf16>
    %cst_16 = arith.constant dense<0.000000e+00> : vector<8x8xf32>
    %54 = tpu.matmul %53, %37, %cst_16 {dimension_numbers = #tpu.dot_dimension_numbers<[1], [0], [0], [1], [0, 0, 1, 1], [], []>} : vector<8x8xbf16>, vector<8x8xbf16>, vector<8x8xf32> -> vector<8x8xf32>
    %55 = vector.extract_strided_slice %2 {offsets = [0, 16], sizes = [8, 8], strides = [1, 1]} : vector<8x32xbf16> to vector<8x8xbf16>
    %56 = vector.extract_strided_slice %3 {offsets = [0, 16], sizes = [8, 8], strides = [1, 1]} : vector<8x32xbf16> to vector<8x8xbf16>
    %57 = vector.extract_strided_slice %4 {offsets = [0, 16], sizes = [8, 8], strides = [1, 1]} : vector<8x32xbf16> to vector<8x8xbf16>
    %cst_17 = arith.constant dense<0.000000e+00> : vector<8x8xf32>
    %58 = tpu.matmul %55, %56, %cst_17 {dimension_numbers = #tpu.dot_dimension_numbers<[1], [1], [0], [0], [0, 0, 1, 0], [], []>} : vector<8x8xbf16>, vector<8x8xbf16>, vector<8x8xf32> -> vector<8x8xf32>
    %cst_18 = arith.constant 0.353553385 : f32
    %59 = vector.broadcast %cst_18 : f32 to vector<8x8xf32>
    %60 = arith.mulf %58, %59 : vector<8x8xf32>
    %cst_19 = arith.constant -1.000000e+04 : f32
    %61 = vector.broadcast %cst_19 : f32 to vector<8x8xf32>
    %62 = arith.select %14, %60, %61 : vector<8x8xi1>, vector<8x8xf32>
    %cst_20 = arith.constant dense<0xFF800000> : vector<8xf32>
    %63 = vector.multi_reduction <maximumf>, %62, %cst_20 [1] : vector<8x8xf32> to vector<8xf32>
    %64 = vector.shape_cast %63 : vector<8xf32> to vector<8x1xf32>
    %65 = vector.broadcast %64 : vector<8x1xf32> to vector<8x8xf32>
    %66 = arith.subf %62, %65 : vector<8x8xf32>
    %67 = math.exp %66 : vector<8x8xf32>
    %cst_21 = arith.constant dense<0.000000e+00> : vector<8xf32>
    %68 = vector.multi_reduction <add>, %67, %cst_21 [1] : vector<8x8xf32> to vector<8xf32>
    %69 = vector.shape_cast %68 : vector<8xf32> to vector<8x1xf32>
    %70 = tpu.reciprocal %69 {approx = true} : vector<8x1xf32> -> vector<8x1xf32>
    %71 = vector.broadcast %70 : vector<8x1xf32> to vector<8x8xf32>
    %72 = arith.mulf %67, %71 : vector<8x8xf32>
    %73 = arith.truncf %72 : vector<8x8xf32> to vector<8x8xbf16>
    %cst_22 = arith.constant dense<0.000000e+00> : vector<8x8xf32>
    %74 = tpu.matmul %73, %57, %cst_22 {dimension_numbers = #tpu.dot_dimension_numbers<[1], [0], [0], [1], [0, 0, 1, 1], [], []>} : vector<8x8xbf16>, vector<8x8xbf16>, vector<8x8xf32> -> vector<8x8xf32>
    %75 = vector.extract_strided_slice %2 {offsets = [0, 24], sizes = [8, 8], strides = [1, 1]} : vector<8x32xbf16> to vector<8x8xbf16>
    %76 = vector.extract_strided_slice %3 {offsets = [0, 24], sizes = [8, 8], strides = [1, 1]} : vector<8x32xbf16> to vector<8x8xbf16>
    %77 = vector.extract_strided_slice %4 {offsets = [0, 24], sizes = [8, 8], strides = [1, 1]} : vector<8x32xbf16> to vector<8x8xbf16>
    %cst_23 = arith.constant dense<0.000000e+00> : vector<8x8xf32>
    %78 = tpu.matmul %75, %76, %cst_23 {dimension_numbers = #tpu.dot_dimension_numbers<[1], [1], [0], [0], [0, 0, 1, 0], [], []>} : vector<8x8xbf16>, vector<8x8xbf16>, vector<8x8xf32> -> vector<8x8xf32>
    %cst_24 = arith.constant 0.353553385 : f32
    %79 = vector.broadcast %cst_24 : f32 to vector<8x8xf32>
    %80 = arith.mulf %78, %79 : vector<8x8xf32>
    %cst_25 = arith.constant -1.000000e+04 : f32
    %81 = vector.broadcast %cst_25 : f32 to vector<8x8xf32>
    %82 = arith.select %14, %80, %81 : vector<8x8xi1>, vector<8x8xf32>
    %cst_26 = arith.constant dense<0xFF800000> : vector<8xf32>
    %83 = vector.multi_reduction <maximumf>, %82, %cst_26 [1] : vector<8x8xf32> to vector<8xf32>
    %84 = vector.shape_cast %83 : vector<8xf32> to vector<8x1xf32>
    %85 = vector.broadcast %84 : vector<8x1xf32> to vector<8x8xf32>
    %86 = arith.subf %82, %85 : vector<8x8xf32>
    %87 = math.exp %86 : vector<8x8xf32>
    %cst_27 = arith.constant dense<0.000000e+00> : vector<8xf32>
    %88 = vector.multi_reduction <add>, %87, %cst_27 [1] : vector<8x8xf32> to vector<8xf32>
    %89 = vector.shape_cast %88 : vector<8xf32> to vector<8x1xf32>
    %90 = tpu.reciprocal %89 {approx = true} : vector<8x1xf32> -> vector<8x1xf32>
    %91 = vector.broadcast %90 : vector<8x1xf32> to vector<8x8xf32>
    %92 = arith.mulf %87, %91 : vector<8x8xf32>
    %93 = arith.truncf %92 : vector<8x8xf32> to vector<8x8xbf16>
    %cst_28 = arith.constant dense<0.000000e+00> : vector<8x8xf32>
    %94 = tpu.matmul %93, %77, %cst_28 {dimension_numbers = #tpu.dot_dimension_numbers<[1], [0], [0], [1], [0, 0, 1, 1], [], []>} : vector<8x8xbf16>, vector<8x8xbf16>, vector<8x8xf32> -> vector<8x8xf32>
    %95 = tpu.concatenate %34, %54, %74, %94 in 1 : vector<8x8xf32>, vector<8x8xf32>, vector<8x8xf32>, vector<8x8xf32> -> vector<8x32xf32>
    %96 = arith.truncf %95 : vector<8x32xf32> to vector<8x32xbf16>
    %c0_29 = arith.constant 0 : index
    %c0_30 = arith.constant 0 : index
    %c0_31 = arith.constant 0 : index
    %97 = vector.load %arg3[%c0_29, %c0_30, %c0_31] : memref<1x8x32xbf16, #tpu.memory_space<vmem>>, vector<1x8x32xbf16>
    %98 = vector.shape_cast %97 : vector<1x8x32xbf16> to vector<8x32xbf16>
    %99 = vector.shape_cast %96 : vector<8x32xbf16> to vector<1x8x32xbf16>
    tpu.vector_store %arg3[%c0_29, %c0_30, %c0_31], %99 {strides = array<i32>} : memref<1x8x32xbf16, #tpu.memory_space<vmem>>, vector<1x8x32xbf16>,
    return
  }
  func.func @transform_0(%arg0: i32) -> (i32, i32, i32) {
    %c0_i32 = arith.constant 0 : i32
    %c0_i32_0 = arith.constant 0 : i32
    %c0_i32_1 = arith.constant 0 : i32
    return %arg0, %c0_i32, %c0_i32_0 : i32, i32, i32
  }
  func.func @transform_1(%arg0: i32) -> (i32, i32, i32) {
    %c0_i32 = arith.constant 0 : i32
    %c0_i32_0 = arith.constant 0 : i32
    %c0_i32_1 = arith.constant 0 : i32
    return %arg0, %c0_i32, %c0_i32_0 : i32, i32, i32
  }
  func.func @transform_2(%arg0: i32) -> (i32, i32, i32) {
    %c0_i32 = arith.constant 0 : i32
    %c0_i32_0 = arith.constant 0 : i32
    %c0_i32_1 = arith.constant 0 : i32
    return %arg0, %c0_i32, %c0_i32_0 : i32, i32, i32
  }
}

module attributes {stable_mosaic.version = 11 : i64} {
  func.func @_matmul_kernel(%arg0: i32, %arg1: i32, %arg2: i32, %arg3: memref<16x128xbf16, #tpu.memory_space<vmem>>, %arg4: memref<128x128xbf16, #tpu.memory_space<vmem>>, %arg5: memref<1x128xf32, #tpu.memory_space<vmem>>, %arg6: memref<16x128xf32, #tpu.memory_space<vmem>>, %arg7: memref<16x128xf32, #tpu.memory_space<vmem>>) attributes {dimension_semantics = [#tpu.dimension_semantics<parallel>, #tpu.dimension_semantics<parallel>, #tpu.dimension_semantics<arbitrary>], iteration_bounds = array<i64: 1, 1, 1>, scalar_prefetch = 0 : i64, scratch_operands = 1 : i64, tpu.core_type = #tpu.core_type<tc>, window_params = [{transform_indices = @transform_0, window_bounds = array<i64: 16, 128>}, {transform_indices = @transform_1, window_bounds = array<i64: 128, 128>}, {transform_indices = @transform_2, window_bounds = array<i64: 1, 128>}, {transform_indices = @transform_3, window_bounds = array<i64: 16, 128>}]} {
    %c0_i32 = arith.constant 0 : i32
    %0 = arith.cmpi eq, %arg2, %c0_i32 : i32
    %1 = arith.extui %0 : i1 to i32
    %c0_i32_0 = arith.constant 0 : i32
    %2 = arith.cmpi ne, %1, %c0_i32_0 : i32
    scf.if %2 {
      %cst_10 = arith.constant 0.000000e+00 : f32
      %12 = vector.broadcast %cst_10 : f32 to vector<16x128xf32>
      %c0_11 = arith.constant 0 : index
      %c0_12 = arith.constant 0 : index
      %13 = vector.load %arg7[%c0_11, %c0_12] : memref<16x128xf32, #tpu.memory_space<vmem>>, vector<16x128xf32>
      tpu.vector_store %arg7[%c0_11, %c0_12], %12 {strides = array<i32>} : memref<16x128xf32, #tpu.memory_space<vmem>>, vector<16x128xf32>,
    } else {
    }
    %c0 = arith.constant 0 : index
    %c0_1 = arith.constant 0 : index
    %3 = vector.load %arg7[%c0, %c0_1] : memref<16x128xf32, #tpu.memory_space<vmem>>, vector<16x128xf32>
    %c0_2 = arith.constant 0 : index
    %c0_3 = arith.constant 0 : index
    %4 = vector.load %arg3[%c0_2, %c0_3] : memref<16x128xbf16, #tpu.memory_space<vmem>>, vector<16x128xbf16>
    %c0_4 = arith.constant 0 : index
    %c0_5 = arith.constant 0 : index
    %5 = vector.load %arg4[%c0_4, %c0_5] : memref<128x128xbf16, #tpu.memory_space<vmem>>, vector<128x128xbf16>
    %cst = arith.constant dense<0.000000e+00> : vector<16x128xf32>
    %6 = tpu.matmul %4, %5, %cst {dimension_numbers = #tpu.dot_dimension_numbers<[1], [0], [0], [1], [0, 0, 1, 1], [], []>} : vector<16x128xbf16>, vector<128x128xbf16>, vector<16x128xf32> -> vector<16x128xf32>
    %7 = arith.addf %3, %6 : vector<16x128xf32>
    %c0_6 = arith.constant 0 : index
    %c0_7 = arith.constant 0 : index
    %8 = vector.load %arg7[%c0_6, %c0_7] : memref<16x128xf32, #tpu.memory_space<vmem>>, vector<16x128xf32>
    tpu.vector_store %arg7[%c0_6, %c0_7], %7 {strides = array<i32>} : memref<16x128xf32, #tpu.memory_space<vmem>>, vector<16x128xf32>,
    %c0_i32_8 = arith.constant 0 : i32
    %9 = arith.cmpi eq, %arg2, %c0_i32_8 : i32
    %10 = arith.extui %9 : i1 to i32
    %c0_i32_9 = arith.constant 0 : i32
    %11 = arith.cmpi ne, %10, %c0_i32_9 : i32
    scf.if %11 {
      %c0_10 = arith.constant 0 : index
      %c0_11 = arith.constant 0 : index
      %12 = vector.load %arg7[%c0_10, %c0_11] : memref<16x128xf32, #tpu.memory_space<vmem>>, vector<16x128xf32>
      %c0_12 = arith.constant 0 : index
      %c0_13 = arith.constant 0 : index
      %13 = vector.load %arg5[%c0_12, %c0_13] : memref<1x128xf32, #tpu.memory_space<vmem>>, vector<1x128xf32>
      %14 = vector.broadcast %13 : vector<1x128xf32> to vector<16x128xf32>
      %15 = arith.addf %12, %14 : vector<16x128xf32>
      %c0_14 = arith.constant 0 : index
      %c0_15 = arith.constant 0 : index
      %16 = vector.load %arg6[%c0_14, %c0_15] : memref<16x128xf32, #tpu.memory_space<vmem>>, vector<16x128xf32>
      tpu.vector_store %arg6[%c0_14, %c0_15], %15 {strides = array<i32>} : memref<16x128xf32, #tpu.memory_space<vmem>>, vector<16x128xf32>,
    } else {
    }
    return
  }
  func.func @transform_0(%arg0: i32, %arg1: i32, %arg2: i32) -> (i32, i32) {
    %c0_i32 = arith.constant 0 : i32
    return %arg0, %arg2 : i32, i32
  }
  func.func @transform_1(%arg0: i32, %arg1: i32, %arg2: i32) -> (i32, i32) {
    %c0_i32 = arith.constant 0 : i32
    return %arg2, %arg1 : i32, i32
  }
  func.func @transform_2(%arg0: i32, %arg1: i32, %arg2: i32) -> (i32, i32) {
    %c0_i32 = arith.constant 0 : i32
    %c0_i32_0 = arith.constant 0 : i32
    return %c0_i32, %arg1 : i32, i32
  }
  func.func @transform_3(%arg0: i32, %arg1: i32, %arg2: i32) -> (i32, i32) {
    %c0_i32 = arith.constant 0 : i32
    return %arg0, %arg1 : i32, i32
  }
}

module attributes {stable_mosaic.version = 11 : i64} {
  func.func @_cross_attn_kernel(%arg0: i32, %arg1: memref<1x8x32xbf16, #tpu.memory_space<vmem>>, %arg2: memref<1x8x64xbf16, #tpu.memory_space<vmem>>, %arg3: memref<1x1x8xf32, #tpu.memory_space<vmem>>, %arg4: memref<1x8x32xbf16, #tpu.memory_space<vmem>>) attributes {dimension_semantics = [#tpu.dimension_semantics<parallel>], iteration_bounds = array<i64: 2>, scalar_prefetch = 0 : i64, scratch_operands = 0 : i64, tpu.core_type = #tpu.core_type<tc>, window_params = [{transform_indices = @transform_0, window_bounds = array<i64: 1, 8, 32>}, {transform_indices = @transform_1, window_bounds = array<i64: 1, 8, 64>}, {transform_indices = @transform_2, window_bounds = array<i64: 1, 1, 8>}, {transform_indices = @transform_3, window_bounds = array<i64: 1, 8, 32>}]} {
    %c0 = arith.constant 0 : index
    %c0_0 = arith.constant 0 : index
    %c0_1 = arith.constant 0 : index
    %0 = vector.load %arg1[%c0, %c0_0, %c0_1] : memref<1x8x32xbf16, #tpu.memory_space<vmem>>, vector<1x8x32xbf16>
    %1 = vector.shape_cast %0 : vector<1x8x32xbf16> to vector<8x32xbf16>
    %c0_2 = arith.constant 0 : index
    %c0_3 = arith.constant 0 : index
    %c0_4 = arith.constant 0 : index
    %2 = vector.load %arg2[%c0_2, %c0_3, %c0_4] : memref<1x8x64xbf16, #tpu.memory_space<vmem>>, vector<1x8x64xbf16>
    %3 = vector.shape_cast %2 : vector<1x8x64xbf16> to vector<8x64xbf16>
    %4 = vector.extract_strided_slice %3 {offsets = [0, 0], sizes = [8, 32], strides = [1, 1]} : vector<8x64xbf16> to vector<8x32xbf16>
    %5 = vector.extract_strided_slice %3 {offsets = [0, 32], sizes = [8, 32], strides = [1, 1]} : vector<8x64xbf16> to vector<8x32xbf16>
    %c0_5 = arith.constant 0 : index
    %c0_6 = arith.constant 0 : index
    %c0_7 = arith.constant 0 : index
    %6 = vector.load %arg3[%c0_5, %c0_6, %c0_7] : memref<1x1x8xf32, #tpu.memory_space<vmem>>, vector<1x1x8xf32>
    %7 = vector.shape_cast %6 : vector<1x1x8xf32> to vector<1x8xf32>
    %8 = vector.shape_cast %7 : vector<1x8xf32> to vector<1x8xf32>
    %9 = vector.broadcast %8 : vector<1x8xf32> to vector<8x8xf32>
    %cst = arith.constant 0.000000e+00 : f32
    %10 = vector.broadcast %cst : f32 to vector<8x8xf32>
    %11 = arith.cmpf ogt, %9, %10 : vector<8x8xf32>
    %12 = vector.extract_strided_slice %1 {offsets = [0, 0], sizes = [8, 8], strides = [1, 1]} : vector<8x32xbf16> to vector<8x8xbf16>
    %13 = vector.extract_strided_slice %4 {offsets = [0, 0], sizes = [8, 8], strides = [1, 1]} : vector<8x32xbf16> to vector<8x8xbf16>
    %14 = vector.extract_strided_slice %5 {offsets = [0, 0], sizes = [8, 8], strides = [1, 1]} : vector<8x32xbf16> to vector<8x8xbf16>
    %cst_8 = arith.constant dense<0.000000e+00> : vector<8x8xf32>
    %15 = tpu.matmul %12, %13, %cst_8 {dimension_numbers = #tpu.dot_dimension_numbers<[1], [1], [0], [0], [0, 0, 1, 0], [], []>} : vector<8x8xbf16>, vector<8x8xbf16>, vector<8x8xf32> -> vector<8x8xf32>
    %cst_9 = arith.constant 0.353553385 : f32
    %16 = vector.broadcast %cst_9 : f32 to vector<8x8xf32>
    %17 = arith.mulf %15, %16 : vector<8x8xf32>
    %cst_10 = arith.constant -1.000000e+04 : f32
    %18 = vector.broadcast %cst_10 : f32 to vector<8x8xf32>
    %19 = arith.select %11, %17, %18 : vector<8x8xi1>, vector<8x8xf32>
    %cst_11 = arith.constant dense<0xFF800000> : vector<8xf32>
    %20 = vector.multi_reduction <maximumf>, %19, %cst_11 [1] : vector<8x8xf32> to vector<8xf32>
    %21 = vector.shape_cast %20 : vector<8xf32> to vector<8x1xf32>
    %22 = vector.broadcast %21 : vector<8x1xf32> to vector<8x8xf32>
    %23 = arith.subf %19, %22 : vector<8x8xf32>
    %24 = math.exp %23 : vector<8x8xf32>
    %cst_12 = arith.constant dense<0.000000e+00> : vector<8xf32>
    %25 = vector.multi_reduction <add>, %24, %cst_12 [1] : vector<8x8xf32> to vector<8xf32>
    %26 = vector.shape_cast %25 : vector<8xf32> to vector<8x1xf32>
    %27 = tpu.reciprocal %26 {approx = true} : vector<8x1xf32> -> vector<8x1xf32>
    %28 = vector.broadcast %27 : vector<8x1xf32> to vector<8x8xf32>
    %29 = arith.mulf %24, %28 : vector<8x8xf32>
    %30 = arith.truncf %29 : vector<8x8xf32> to vector<8x8xbf16>
    %cst_13 = arith.constant dense<0.000000e+00> : vector<8x8xf32>
    %31 = tpu.matmul %30, %14, %cst_13 {dimension_numbers = #tpu.dot_dimension_numbers<[1], [0], [0], [1], [0, 0, 1, 1], [], []>} : vector<8x8xbf16>, vector<8x8xbf16>, vector<8x8xf32> -> vector<8x8xf32>
    %32 = vector.extract_strided_slice %1 {offsets = [0, 8], sizes = [8, 8], strides = [1, 1]} : vector<8x32xbf16> to vector<8x8xbf16>
    %33 = vector.extract_strided_slice %4 {offsets = [0, 8], sizes = [8, 8], strides = [1, 1]} : vector<8x32xbf16> to vector<8x8xbf16>
    %34 = vector.extract_strided_slice %5 {offsets = [0, 8], sizes = [8, 8], strides = [1, 1]} : vector<8x32xbf16> to vector<8x8xbf16>
    %cst_14 = arith.constant dense<0.000000e+00> : vector<8x8xf32>
    %35 = tpu.matmul %32, %33, %cst_14 {dimension_numbers = #tpu.dot_dimension_numbers<[1], [1], [0], [0], [0, 0, 1, 0], [], []>} : vector<8x8xbf16>, vector<8x8xbf16>, vector<8x8xf32> -> vector<8x8xf32>
    %cst_15 = arith.constant 0.353553385 : f32
    %36 = vector.broadcast %cst_15 : f32 to vector<8x8xf32>
    %37 = arith.mulf %35, %36 : vector<8x8xf32>
    %cst_16 = arith.constant -1.000000e+04 : f32
    %38 = vector.broadcast %cst_16 : f32 to vector<8x8xf32>
    %39 = arith.select %11, %37, %38 : vector<8x8xi1>, vector<8x8xf32>
    %cst_17 = arith.constant dense<0xFF800000> : vector<8xf32>
    %40 = vector.multi_reduction <maximumf>, %39, %cst_17 [1] : vector<8x8xf32> to vector<8xf32>
    %41 = vector.shape_cast %40 : vector<8xf32> to vector<8x1xf32>
    %42 = vector.broadcast %41 : vector<8x1xf32> to vector<8x8xf32>
    %43 = arith.subf %39, %42 : vector<8x8xf32>
    %44 = math.exp %43 : vector<8x8xf32>
    %cst_18 = arith.constant dense<0.000000e+00> : vector<8xf32>
    %45 = vector.multi_reduction <add>, %44, %cst_18 [1] : vector<8x8xf32> to vector<8xf32>
    %46 = vector.shape_cast %45 : vector<8xf32> to vector<8x1xf32>
    %47 = tpu.reciprocal %46 {approx = true} : vector<8x1xf32> -> vector<8x1xf32>
    %48 = vector.broadcast %47 : vector<8x1xf32> to vector<8x8xf32>
    %49 = arith.mulf %44, %48 : vector<8x8xf32>
    %50 = arith.truncf %49 : vector<8x8xf32> to vector<8x8xbf16>
    %cst_19 = arith.constant dense<0.000000e+00> : vector<8x8xf32>
    %51 = tpu.matmul %50, %34, %cst_19 {dimension_numbers = #tpu.dot_dimension_numbers<[1], [0], [0], [1], [0, 0, 1, 1], [], []>} : vector<8x8xbf16>, vector<8x8xbf16>, vector<8x8xf32> -> vector<8x8xf32>
    %52 = vector.extract_strided_slice %1 {offsets = [0, 16], sizes = [8, 8], strides = [1, 1]} : vector<8x32xbf16> to vector<8x8xbf16>
    %53 = vector.extract_strided_slice %4 {offsets = [0, 16], sizes = [8, 8], strides = [1, 1]} : vector<8x32xbf16> to vector<8x8xbf16>
    %54 = vector.extract_strided_slice %5 {offsets = [0, 16], sizes = [8, 8], strides = [1, 1]} : vector<8x32xbf16> to vector<8x8xbf16>
    %cst_20 = arith.constant dense<0.000000e+00> : vector<8x8xf32>
    %55 = tpu.matmul %52, %53, %cst_20 {dimension_numbers = #tpu.dot_dimension_numbers<[1], [1], [0], [0], [0, 0, 1, 0], [], []>} : vector<8x8xbf16>, vector<8x8xbf16>, vector<8x8xf32> -> vector<8x8xf32>
    %cst_21 = arith.constant 0.353553385 : f32
    %56 = vector.broadcast %cst_21 : f32 to vector<8x8xf32>
    %57 = arith.mulf %55, %56 : vector<8x8xf32>
    %cst_22 = arith.constant -1.000000e+04 : f32
    %58 = vector.broadcast %cst_22 : f32 to vector<8x8xf32>
    %59 = arith.select %11, %57, %58 : vector<8x8xi1>, vector<8x8xf32>
    %cst_23 = arith.constant dense<0xFF800000> : vector<8xf32>
    %60 = vector.multi_reduction <maximumf>, %59, %cst_23 [1] : vector<8x8xf32> to vector<8xf32>
    %61 = vector.shape_cast %60 : vector<8xf32> to vector<8x1xf32>
    %62 = vector.broadcast %61 : vector<8x1xf32> to vector<8x8xf32>
    %63 = arith.subf %59, %62 : vector<8x8xf32>
    %64 = math.exp %63 : vector<8x8xf32>
    %cst_24 = arith.constant dense<0.000000e+00> : vector<8xf32>
    %65 = vector.multi_reduction <add>, %64, %cst_24 [1] : vector<8x8xf32> to vector<8xf32>
    %66 = vector.shape_cast %65 : vector<8xf32> to vector<8x1xf32>
    %67 = tpu.reciprocal %66 {approx = true} : vector<8x1xf32> -> vector<8x1xf32>
    %68 = vector.broadcast %67 : vector<8x1xf32> to vector<8x8xf32>
    %69 = arith.mulf %64, %68 : vector<8x8xf32>
    %70 = arith.truncf %69 : vector<8x8xf32> to vector<8x8xbf16>
    %cst_25 = arith.constant dense<0.000000e+00> : vector<8x8xf32>
    %71 = tpu.matmul %70, %54, %cst_25 {dimension_numbers = #tpu.dot_dimension_numbers<[1], [0], [0], [1], [0, 0, 1, 1], [], []>} : vector<8x8xbf16>, vector<8x8xbf16>, vector<8x8xf32> -> vector<8x8xf32>
    %72 = vector.extract_strided_slice %1 {offsets = [0, 24], sizes = [8, 8], strides = [1, 1]} : vector<8x32xbf16> to vector<8x8xbf16>
    %73 = vector.extract_strided_slice %4 {offsets = [0, 24], sizes = [8, 8], strides = [1, 1]} : vector<8x32xbf16> to vector<8x8xbf16>
    %74 = vector.extract_strided_slice %5 {offsets = [0, 24], sizes = [8, 8], strides = [1, 1]} : vector<8x32xbf16> to vector<8x8xbf16>
    %cst_26 = arith.constant dense<0.000000e+00> : vector<8x8xf32>
    %75 = tpu.matmul %72, %73, %cst_26 {dimension_numbers = #tpu.dot_dimension_numbers<[1], [1], [0], [0], [0, 0, 1, 0], [], []>} : vector<8x8xbf16>, vector<8x8xbf16>, vector<8x8xf32> -> vector<8x8xf32>
    %cst_27 = arith.constant 0.353553385 : f32
    %76 = vector.broadcast %cst_27 : f32 to vector<8x8xf32>
    %77 = arith.mulf %75, %76 : vector<8x8xf32>
    %cst_28 = arith.constant -1.000000e+04 : f32
    %78 = vector.broadcast %cst_28 : f32 to vector<8x8xf32>
    %79 = arith.select %11, %77, %78 : vector<8x8xi1>, vector<8x8xf32>
    %cst_29 = arith.constant dense<0xFF800000> : vector<8xf32>
    %80 = vector.multi_reduction <maximumf>, %79, %cst_29 [1] : vector<8x8xf32> to vector<8xf32>
    %81 = vector.shape_cast %80 : vector<8xf32> to vector<8x1xf32>
    %82 = vector.broadcast %81 : vector<8x1xf32> to vector<8x8xf32>
    %83 = arith.subf %79, %82 : vector<8x8xf32>
    %84 = math.exp %83 : vector<8x8xf32>
    %cst_30 = arith.constant dense<0.000000e+00> : vector<8xf32>
    %85 = vector.multi_reduction <add>, %84, %cst_30 [1] : vector<8x8xf32> to vector<8xf32>
    %86 = vector.shape_cast %85 : vector<8xf32> to vector<8x1xf32>
    %87 = tpu.reciprocal %86 {approx = true} : vector<8x1xf32> -> vector<8x1xf32>
    %88 = vector.broadcast %87 : vector<8x1xf32> to vector<8x8xf32>
    %89 = arith.mulf %84, %88 : vector<8x8xf32>
    %90 = arith.truncf %89 : vector<8x8xf32> to vector<8x8xbf16>
    %cst_31 = arith.constant dense<0.000000e+00> : vector<8x8xf32>
    %91 = tpu.matmul %90, %74, %cst_31 {dimension_numbers = #tpu.dot_dimension_numbers<[1], [0], [0], [1], [0, 0, 1, 1], [], []>} : vector<8x8xbf16>, vector<8x8xbf16>, vector<8x8xf32> -> vector<8x8xf32>
    %92 = tpu.concatenate %31, %51, %71, %91 in 1 : vector<8x8xf32>, vector<8x8xf32>, vector<8x8xf32>, vector<8x8xf32> -> vector<8x32xf32>
    %93 = arith.truncf %92 : vector<8x32xf32> to vector<8x32xbf16>
    %c0_32 = arith.constant 0 : index
    %c0_33 = arith.constant 0 : index
    %c0_34 = arith.constant 0 : index
    %94 = vector.load %arg4[%c0_32, %c0_33, %c0_34] : memref<1x8x32xbf16, #tpu.memory_space<vmem>>, vector<1x8x32xbf16>
    %95 = vector.shape_cast %94 : vector<1x8x32xbf16> to vector<8x32xbf16>
    %96 = vector.shape_cast %93 : vector<8x32xbf16> to vector<1x8x32xbf16>
    tpu.vector_store %arg4[%c0_32, %c0_33, %c0_34], %96 {strides = array<i32>} : memref<1x8x32xbf16, #tpu.memory_space<vmem>>, vector<1x8x32xbf16>,
    return
  }
  func.func @transform_0(%arg0: i32) -> (i32, i32, i32) {
    %c0_i32 = arith.constant 0 : i32
    %c0_i32_0 = arith.constant 0 : i32
    %c0_i32_1 = arith.constant 0 : i32
    return %arg0, %c0_i32, %c0_i32_0 : i32, i32, i32
  }
  func.func @transform_1(%arg0: i32) -> (i32, i32, i32) {
    %c0_i32 = arith.constant 0 : i32
    %c0_i32_0 = arith.constant 0 : i32
    %c0_i32_1 = arith.constant 0 : i32
    return %arg0, %c0_i32, %c0_i32_0 : i32, i32, i32
  }
  func.func @transform_2(%arg0: i32) -> (i32, i32, i32) {
    %c0_i32 = arith.constant 0 : i32
    %c0_i32_0 = arith.constant 0 : i32
    %c0_i32_1 = arith.constant 0 : i32
    return %arg0, %c0_i32, %c0_i32_0 : i32, i32, i32
  }
  func.func @transform_3(%arg0: i32) -> (i32, i32, i32) {
    %c0_i32 = arith.constant 0 : i32
    %c0_i32_0 = arith.constant 0 : i32
    %c0_i32_1 = arith.constant 0 : i32
    return %arg0, %c0_i32, %c0_i32_0 : i32, i32, i32
  }
}

</mosaic_0001>

<bundles_post_ra>
// kernel: _lambda_.38
= control target key start
LH: loop header
LB: loop body
LE: loop exit
PB: predicated region body
PF: predicated region fallthrough
CT: control target
= control target key end

     0   :  { %vm27_vm0 = vcmask 261120   ;;  %v117_v10 = vmov 32.0   ;;  %vm93_vm6 = vcmask 257024   ;;  %s165_s0 = inlined_call_operand.vmem [shape: bf16[16,32], index: 0, kind: input, shape index: {}]   ;;  %s166_s1 = inlined_call_operand.vmem [shape: bf16[16,32], index: 1, kind: input, shape index: {}]   ;;  %s167_s2 = inlined_call_operand.vmem [shape: f32[1,32], index: 2, kind: input, shape index: {}]   ;;  %s168_s3 = inlined_call_operand.vmem [shape: f32[1,32], index: 3, kind: input, shape index: {}]   ;;  %s169_s4 = inlined_call_operand.vmem [shape: bf16[16,32], index: 4, kind: output, shape index: {}]  }
   0x1   :  { %v101_v0 = vld [vmem:[%s165_s0] sm:$0xff]   ;;  %111 = vrcp.f32 %v117_v10 }
   0x2   :  { %v105_v1 = vld [vmem:[%s166_s1] sm:$0xff]   ;;  %v102_v2 = vunpack.c.l.bf16 %v101_v0  ;;  %v103_v5 = vunpack.c.h.bf16 %v101_v0 }
   0x3   :  { %v106_v3 = vunpack.c.l.bf16 %v105_v1  ;;  %v107_v6 = vunpack.c.h.bf16 %v105_v1  ;;  %v109_v41 = vld [vmem:[%s167_s2] ss:$0 sm:$0xff] }
   0x4   :  { %v110_v44 = vld [vmem:[%s168_s3] ss:$0 sm:$0xff] }
   0x5   :  { %v25_v4 = vadd.f32 %v106_v3, %v102_v2  ;;  %v26_v8 = vadd.f32 %v107_v6, %v103_v5 }
   0x7   :  { %v28_v7 = vsel %vm27_vm0, %v25_v4, 0.0  ;;  %v31_v9 = vsel %vm27_vm0, %v26_v8, 0.0  ;;  %v112_v11 = vpop.eup %111 }
   0x8   :  { %29 = vadd.xlane.f32.xlu0 %v28_v7  ;;  %v35_v12 = vmul.f32 32.0, %v112_v11  ;;  %vm39_vm1 = vweird.f32 %v112_v11 }
   0xa   :  { %v36_v13 = vsub.f32 1.0, %v35_v12 }
   0xc   :  { %v37_v14 = vmul.f32 %v112_v11, %v36_v13 }
   0xe   :  { %v38_v15 = vadd.f32 %v112_v11, %v37_v14 }
  0x10   :  { %32 = vadd.xlane.f32.xlu0 %v31_v9  ;;  %v40_v16 = vsel %vm39_vm1, %v112_v11, %v38_v15 }
  0x7b   :  { %v30_v17 = vpop.xlane.xlu0 %29 }
  0x7c   :  { %v41_v18 = vmul.f32 %v40_v16, %v30_v17 }
  0x7e   :  { %v43_v19 = vsub.f32 %v25_v4, %v41_v18 }
  0x80   :  { %v45_v20 = vmul.f32 %v43_v19, %v43_v19 }
  0x82   :  { %v47_v21 = vsel %vm27_vm0, %v45_v20, 0.0 }
  0x83   :  { %48 = vadd.xlane.f32.xlu1 %v47_v21  ;;  %v33_v22 = vpop.xlane.xlu0 %32 }
  0x84   :  { %v42_v23 = vmul.f32 %v40_v16, %v33_v22 }
  0x86   :  { %v44_v24 = vsub.f32 %v26_v8, %v42_v23 }
  0x88   :  { %v46_v25 = vmul.f32 %v44_v24, %v44_v24 }
  0x8a   :  { %v50_v26 = vsel %vm27_vm0, %v46_v25, 0.0 }
  0x8b   :  { %51 = vadd.xlane.f32.xlu1 %v50_v26 }
  0xf6   :  { %v49_v27 = vpop.xlane.xlu1 %48 }
  0xf7   :  { %v53_v28 = vmul.f32 %v49_v27, %v40_v16 }
  0xf9   :  { %v55_v29 = vadd.f32 1e-12, %v53_v28 }
  0xfb   :  { %113 = vrsqrt.f32 %v55_v29  ;;  %vm63_vm3 = vweird.f32 %v55_v29 }
  0xfe   :  { %v52_v30 = vpop.xlane.xlu1 %51 }
  0xff   :  { %v54_v31 = vmul.f32 %v52_v30, %v40_v16 }
 0x101   :  { %v114_v32 = vpop.eup %113  ;;  %v56_v33 = vadd.f32 1e-12, %v54_v31 }
 0x102   :  { %v58_v34 = vmul.f32 %v114_v32, %v55_v29  ;;  %vm64_vm2 = vweird.f32 %v114_v32 }
 0x103   :  { %115 = vrsqrt.f32 %v56_v33  ;;  %vm65_vm4 = vmor %vm63_vm3, %vm64_vm2  ;;  %vm73_vm7 = vweird.f32 %v56_v33 }
 0x104   :  { %v59_v35 = vmul.f32 %v114_v32, %v58_v34 }
 0x106   :  { %v60_v36 = vmul.f32 0.5, %v59_v35 }
 0x108   :  { %v61_v37 = vsub.f32 1.5, %v60_v36 }
 0x109   :  { %v116_v38 = vpop.eup %115 }
 0x10a   :  { %v62_v39 = vmul.f32 %v114_v32, %v61_v37  ;;  %v68_v40 = vmul.f32 %v116_v38, %v56_v33  ;;  %vm74_vm5 = vweird.f32 %v116_v38 }
 0x10b   :  { %vm75_vm8 = vmor %vm73_vm7, %vm74_vm5 }
 0x10c   :  { %v66_v42 = vsel %vm65_vm4, %v114_v32, %v62_v39  ;;  %v69_v43 = vmul.f32 %v116_v38, %v68_v40 }
 0x10d   :  { %v77_v45 = vmul.f32 %v66_v42, %v43_v19 }
 0x10e   :  { %v70_v46 = vmul.f32 0.5, %v69_v43 }
 0x10f   :  { %v83_v47 = vmul.f32 %v109_v41, %v77_v45 }
 0x110   :  { %v71_v48 = vsub.f32 1.5, %v70_v46 }
 0x111   :  { %v89_v49 = vadd.f32 %v110_v44, %v83_v47 }
 0x112   :  { %v72_v50 = vmul.f32 %v116_v38, %v71_v48 }
 0x113   :  { %v91_v51 = vpack.c.bf16 %v89_v49, %v89_v49 }
 0x114   :  { %v76_v52 = vsel %vm75_vm8, %v116_v38, %v72_v50 }
 0x115   :  { %94 = vst.msk [vmem:[%s169_s4] sm:$0xf] %vm93_vm6, %v91_v51  ;;  %v78_v53 = vmul.f32 %v76_v52, %v44_v24 }
 0x117   :  { %v84_v54 = vmul.f32 %v109_v41, %v78_v53 }
 0x119   :  { %v90_v55 = vadd.f32 %v110_v44, %v84_v54 }
 0x11b   :  { %v92_v56 = vpack.c.bf16 %v90_v55, %v90_v55 }
 0x11d   :  { %95 = vst.msk [vmem:[%s169_s4 + $0x4] sm:$0xf] %vm93_vm6, %v92_v56 }

// kernel: _lambda_.35
= control target key start
LH: loop header
LB: loop body
LE: loop exit
PB: predicated region body
PF: predicated region fallthrough
CT: control target
= control target key end

     0   :  { %s235_s1 = inlined_call_operand.vmem [shape: bf16[128,128], index: 1, kind: input, shape index: {}]   ;;  %s236_s2 = inlined_call_operand.vmem [shape: f32[1,128], index: 2, kind: input, shape index: {}]   ;;  %s237_s0 = inlined_call_operand.vmem [shape: bf16[16,128], index: 0, kind: input, shape index: {}]   ;;  %s238_s3 = inlined_call_operand.vmem [shape: bf16[16,128], index: 3, kind: output, shape index: {}]  }
   0x1   :  { %v175_v0 = vld [vmem:[%s235_s1 + $0x38] sm:$0xff]  ;;  %v174_v1 = vld [vmem:[%s235_s1 + $0x30] sm:$0xff]  ;;  %v173_v2 = vld [vmem:[%s235_s1 + $0x28] sm:$0xff] }
   0x2   :  { %94 = vmatpush.bf16.msra.mxu0 %v175_v0  ;;  %v172_v3 = vld [vmem:[%s235_s1 + $0x20] sm:$0xff]  ;;  %v171_v4 = vld [vmem:[%s235_s1 + $0x18] sm:$0xff]  ;;  %v170_v5 = vld [vmem:[%s235_s1 + $0x10] sm:$0xff] }
   0x3   :  { %v169_v6 = vld [vmem:[%s235_s1 + $0x8] sm:$0xff]  ;;  %v168_v7 = vld [vmem:[%s235_s1] sm:$0xff] }
   0x4   :  { %v167_v8 = vld [vmem:[%s237_s0] sm:$0xff] }
   0x5   :  { %v181_v10 = vld [vmem:[%s236_s2] ss:$0 sm:$0xff] }
   0x6   :  { %95 = vmatpush.bf16.msra.mxu0 %v174_v1 }
   0xa   :  { %96 = vmatpush.bf16.msra.mxu0 %v173_v2 }
   0xe   :  { %97 = vmatpush.bf16.msra.mxu0 %v172_v3 }
  0x12   :  { %98 = vmatpush.bf16.msra.mxu0 %v171_v4 }
  0x16   :  { %99 = vmatpush.bf16.msra.mxu0 %v170_v5 }
  0x1a   :  { %100 = vmatpush.bf16.msra.mxu0 %v169_v6 }
  0x1e   :  { %101 = vmatpush.bf16.msra.mxu0 %v168_v7 }
  0x21   :  { %102 = vmatmul.bf16.vlgmr.msra.gmra.mxu0 %v167_v8 }
  0x9e   :  { %v103_v9 = vpop.f32.mrf.mxu0 }
  0x9f   :  { %v121_v12 = vadd.f32 %v181_v10, %v103_v9 }
  0xa6   :  { %v105_v11 = vpop.f32.mrf.mxu0 }
  0xa7   :  { %v122_v13 = vadd.f32 %v181_v10, %v105_v11 }
  0xa9   :  { %v179_v14 = vpack.c.bf16 %v122_v13, %v121_v12 }
  0xab   :  { %180 = vst [vmem:[%s238_s3] sm:$0xff] %v179_v14  }

// kernel: _lambda_.36
= control target key start
LH: loop header
LB: loop body
LE: loop exit
PB: predicated region body
PF: predicated region fallthrough
CT: control target
= control target key end

     0   :  { %s570_s9 = smov 0   ;;  %s643_s0 = inlined_call_operand.vmem [shape: bf16[2,8,96], index: 0, kind: input, shape index: {}]   ;;  %s644_s1 = inlined_call_operand.vmem [shape: f32[2,1,8], index: 1, kind: input, shape index: {}]   ;;  %s645_s2 = inlined_call_operand.vmem [shape: bf16[2,8,32], index: 2, kind: output, shape index: {}]  }
   0x1 LB: > { %s477_s10 = sadd.s32 4294967295, %s539_s9   ;;  %p481_p0 = scmp.ge.s32.totalorder %s539_s9, 1  ;;  %s539_s9 = sphi %s570_s9, %s12_s9  }
   0x2   : > { %p119_p1 = scmp.lt.s32.totalorder %s539_s9, 3 }
   0x4   : > { %p120_p2 = pnand %p481_p0, %p119_p1 }
   0x5   : > { %p142_p3 = scmp.lt.s32.totalorder (!%p120_p2), %s477_s10, 1  ;;  %s541_s15 = smov (!%p120_p2), 96  }
   0x6   : > { %123 = sbr.rel (%p120_p2) target bundleno = 1199 (0x4af), region = 28  ;;  %s542_s16 = smov (!%p120_p2), 88  }
   0x7   : > { %s543_s20 = smov (!%p120_p2), 120   ;;  %s544_s21 = smov (!%p120_p2), 64  }
   0x8   : > { %s545_s22 = smov (!%p120_p2), 80   ;;  %s546_s23 = smov (!%p120_p2), 72  }
   0x9   : > { %s547_s24 = smov (!%p120_p2), 112   ;;  %s548_s25 = smov (!%p120_p2), 104  }
   0xa   : > { %s549_s26 = smov (!%p120_p2), 56   ;;  %s550_s27 = smov (!%p120_p2), 40  }
   0xb   : > { %s647_s10 = smov (!%p142_p3, %s477_s10), 1  ;;  %vm165_vm0 = vcmask 64512   ;;  %vm204_vm2 = vcmask 1043456   ;;  %s551_s28 = smov 48   ;;  %vm408_vm3 = vcmask 130048   ;;  %vm410_vm4 = vcmask 195584  }
   0xc   : > { %s482_s11 = sshll.u32 %s647_s10, 2  ;;  %s148_s19 = scalar_lea.vmem %s644_s1, %s647_s10  ;;  %vm413_vm5 = vcmask 257024  }
   0xd   : > { %s145_s14 = scalar_lea.vmem %s643_s0, %s482_s11  ;;  %v516_v8 = vld [vmem:[%s148_s19] ss:$0 sm:$0xff]  ;;  %s552_s29 = smov 8  }
   0xe   : > { %v154_v0 = vld [vmem:[%s145_s14] sm:$0xf]  ;;  %vm159_vm1 = vcmp.gt.f32.partialorder %v516_v8, 0.0  ;;  %s553_s30 = smov 16   ;;  %s554_s3 = smov 24  }
   0xf   : > { %v161_v1 = vunpack.c.l.b16 %v154_v0  ;;  %s152_s6 = scalar_lea.vmem %s645_s2, %s482_s11 }
  0x11   : > { %v586_v2 = vpack.c.b16 %v161_v1, %v161_v1 }
  0x13   : > { %163 = vrot.lane.b32.xlu0 %v586_v2, %s541_s15  ;;  %223 = vrot.lane.b32.xlu1 %v586_v2, %s542_s16 }
  0x14   : > { %221 = vrot.lane.b32.xlu2 %v586_v2, %s543_s20 }
  0x1c   : > { %199 = vrot.lane.b32.xlu2 %v586_v2, %s544_s21 }
  0x24   : > { %281 = vrot.lane.b32.xlu2 %v586_v2, %s545_s22 }
  0x2c   : > { %339 = vrot.lane.b32.xlu2 %v586_v2, %s546_s23 }
  0x34   : > { %279 = vrot.lane.b32.xlu2 %v586_v2, %s547_s24 }
  0x3c   : > { %337 = vrot.lane.b32.xlu2 %v586_v2, %s548_s25 }
  0x6e   : > { %v222_v7 = vpop.permute.xlu2 %221 }
  0x76   : > { %v200_v14 = vpop.permute.xlu2 %199 }
  0x77   : > { %v206_v19 = vsel %vm204_vm2, %v200_v14, 0 }
  0x78   : > { %215 = vmatpush.bf16.msra.mxu1 %v206_v19 }
  0x7e   : > { %v282_v15 = vpop.permute.xlu2 %281 }
  0x7f   : > { %v287_v17 = vsel %vm165_vm0, %v282_v15, 0 }
  0x80   : > { %296 = vmatpush.bf16.xpose.msrb.mxu1 %v287_v17 }
  0x85   : > { %v164_v3 = vpop.permute.xlu0 %163  ;;  %v224_v5 = vpop.permute.xlu1 %223 }
  0x86   : > { %v170_v4 = vsel %vm165_vm0, %v164_v3, 0  ;;  %v229_v6 = vsel %vm165_vm0, %v224_v5, 0  ;;  %v340_v16 = vpop.permute.xlu2 %339 }
  0x87   : > { %179 = vmatpush.bf16.xpose.msra.mxu0 %v170_v4  ;;  %238 = vmatpush.bf16.xpose.msra.mxu2 %v229_v6  ;;  %v345_v18 = vsel %vm165_vm0, %v340_v16, 0 }
  0x8e   : > { %484 = vmatmul.msk.bf16.vlgmr.msra.gmra.mxu0 %vm165_vm0, %v154_v0  ;;  %486 = vmatmul.msk.bf16.vlgmr.msra.gmra.mxu2 %vm165_vm0, %v222_v7  ;;  %v280_v20 = vpop.permute.xlu2 %279 }
  0x8f   : > { %354 = vmatpush.bf16.xpose.msrb.mxu0 %v345_v18 }
  0x96   : > { %v338_v22 = vpop.permute.xlu2 %337 }
  0x9e   : > { %490 = vmatmul.msk.bf16.vlgmr.msrb.gmra.mxu0 %vm165_vm0, %v338_v22 }
 0x10b   : > { %v181_v9 = vpop.f32.mrf.mxu0 }
 0x10c   : > { %v185_v10 = vmul.f32 0.35355338, %v181_v9 }
 0x10e   : > { %v186_v11 = vsel %vm159_vm1, %v185_v10, -10000.0 }
 0x10f   : > { %v187_v12 = vsel %vm165_vm0, %v186_v11, -inf }
 0x110   : > { %188 = vmax.xlane.f32.xlu0 %v187_v12 }
 0x111   : > { %v240_v21 = vpop.f32.mrf.mxu2 }
 0x112   : > { %v244_v23 = vmul.f32 0.35355338, %v240_v21 }
 0x113   : > { %v183_v13 = vpop.f32.mrf.mxu0 }
 0x114   : > { %v245_v24 = vsel %vm159_vm1, %v244_v23, -10000.0 }
 0x115   : > { %v246_v26 = vsel %vm165_vm0, %v245_v24, -inf }
 0x116   : > { %247 = vmax.xlane.f32.xlu2 %v246_v26 }
 0x119   : > { %v242_v29 = vpop.f32.mrf.mxu2 }
 0x11b   : > { %v356_v32 = vpop.f32.mrf.mxu0 }
 0x11c   : > { %v360_v33 = vmul.f32 0.35355338, %v356_v32 }
 0x11e   : > { %v361_v34 = vsel %vm159_vm1, %v360_v33, -10000.0 }
 0x11f   : > { %v362_v36 = vsel %vm165_vm0, %v361_v34, -inf }
 0x123   : > { %v358_v37 = vpop.f32.mrf.mxu0 }
 0x183   : > { %v189_v25 = vpop.xlane.xlu0 %188 }
 0x184   : > { %v190_v27 = vsub.f32 %v186_v11, %v189_v25 }
 0x186   : > { %v191_v28 = vmul.f32 1.442695, %v190_v27 }
 0x188   : > { %517 = vpow2.f32 %v191_v28 }
 0x189   : > { %v248_v42 = vpop.xlane.xlu2 %247 }
 0x18a   : > { %v249_v44 = vsub.f32 %v245_v24, %v248_v42 }
 0x18c   : > { %v250_v45 = vmul.f32 1.442695, %v249_v44 }
 0x18e   : > { %v518_v30 = vpop.eup %517 }
 0x18f   : > { %v193_v31 = vsel %vm165_vm0, %v518_v30, 0.0 }
 0x190   : > { %194 = vadd.xlane.f32.xlu1 %v193_v31 }
 0x198   : > { %363 = vmax.xlane.f32.xlu1 %v362_v36 }
 0x1b1   : > { %258 = vrot.lane.b32.xlu1 %v586_v2, %s549_s26 }
 0x1b9   : > { %374 = vrot.lane.b32.xlu1 %v586_v2, %s550_s27 }
 0x203   : > { %v195_v35 = vpop.xlane.xlu1 %194 }
 0x204   : > { %519 = vrcp.f32 %v195_v35 }
 0x205   : > { %521 = vpow2.f32 %v250_v45 }
 0x20a   : > { %v520_v38 = vpop.eup %519 }
 0x20b   : > { %v197_v39 = vmul.f32 %v520_v38, %v518_v30  ;;  %v364_v46 = vpop.xlane.xlu1 %363  ;;  %v522_v54 = vpop.eup %521 }
 0x20c   : > { %v365_v49 = vsub.f32 %v361_v34, %v364_v46  ;;  %v252_v55 = vsel %vm165_vm0, %v522_v54, 0.0 }
 0x20d   : > { %v198_v40 = vpack.c.bf16 %v197_v39, %v197_v39 }
 0x20e   : > { %v366_v52 = vmul.f32 1.442695, %v365_v49 }
 0x20f   : > { %485 = vmatmul.msk.bf16.vlgmr.msra.gmra.mxu1 %vm165_vm0, %v198_v40 }
 0x210   : > { %523 = vpow2.f32 %v366_v52 }
 0x216   : > { %v524_v56 = vpop.eup %523 }
 0x217   : > { %v368_v57 = vsel %vm165_vm0, %v524_v56, 0.0 }
 0x21f   : > { %488 = vmatmul.msk.bf16.vlgmr.msrb.gmra.mxu1 %vm165_vm0, %v280_v20 }
 0x223   : > { %v259_v58 = vpop.permute.xlu1 %258 }
 0x224   : > { %v264_v59 = vsel %vm204_vm2, %v259_v58, 0 }
 0x225   : > { %273 = vmatpush.bf16.msra.mxu3 %v264_v59 }
 0x22b   : > { %v375_v60 = vpop.permute.xlu1 %374 }
 0x22c   : > { %v380_v61 = vsel %vm204_vm2, %v375_v60, 0 }
 0x22d   : > { %389 = vmatpush.bf16.msrb.mxu2 %v380_v61 }
 0x28c   : > { %v619_v41 = vpop.f32.mrf.mxu1 }
 0x294   : > { %v219_v43 = vpop.f32.mrf.mxu1 }
 0x29c   : > { %v298_v47 = vpop.f32.mrf.mxu1 }
 0x29d   : > { %v302_v48 = vmul.f32 0.35355338, %v298_v47 }
 0x29f   : > { %v303_v50 = vsel %vm159_vm1, %v302_v48, -10000.0 }
 0x2a0   : > { %v304_v51 = vsel %vm165_vm0, %v303_v50, -inf }
 0x2a1   : > { %305 = vmax.xlane.f32.xlu0 %v304_v51 }
 0x2a4   : > { %v300_v53 = vpop.f32.mrf.mxu1 }
 0x2a9   : > { %253 = vadd.xlane.f32.xlu0 %v252_v55 }
 0x2b1   : > { %369 = vadd.xlane.f32.xlu0 %v368_v57 }
 0x314   : > { %v306_v62 = vpop.xlane.xlu0 %305 }
 0x315   : > { %v307_v63 = vsub.f32 %v303_v50, %v306_v62 }
 0x317   : > { %v308_v0 = vmul.f32 1.442695, %v307_v63 }
 0x319   : > { %525 = vpow2.f32 %v308_v0 }
 0x31c   : > { %v254_v1 = vpop.xlane.xlu0 %253 }
 0x31d   : > { %527 = vrcp.f32 %v254_v1 }
 0x31f   : > { %v526_v3 = vpop.eup %525 }
 0x320   : > { %v310_v4 = vsel %vm165_vm0, %v526_v3, 0.0 }
 0x321   : > { %311 = vadd.xlane.f32.xlu0 %v310_v4 }
 0x323   : > { %v528_v5 = vpop.eup %527 }
 0x324   : > { %v370_v6 = vpop.xlane.xlu0 %369  ;;  %v256_v7 = vmul.f32 %v528_v5, %v522_v54 }
 0x325   : > { %529 = vrcp.f32 %v370_v6 }
 0x326   : > { %v257_v8 = vpack.c.bf16 %v256_v7, %v256_v7 }
 0x328   : > { %487 = vmatmul.msk.bf16.vlgmr.msra.gmra.mxu3 %vm165_vm0, %v257_v8 }
 0x32b   : > { %v530_v9 = vpop.eup %529 }
 0x32c   : > { %v372_v10 = vmul.f32 %v530_v9, %v524_v56 }
 0x32e   : > { %v373_v11 = vpack.c.bf16 %v372_v10, %v372_v10 }
 0x330   : > { %491 = vmatmul.msk.bf16.vlgmr.msrb.gmra.mxu2 %vm165_vm0, %v373_v11 }
 0x335   : > { %316 = vrot.lane.b32.xlu0 %v586_v2, %s551_s28 }
 0x394   : > { %v312_v12 = vpop.xlane.xlu0 %311 }
 0x395   : > { %531 = vrcp.f32 %v312_v12 }
 0x39b   : > { %v532_v13 = vpop.eup %531 }
 0x39c   : > { %v314_v14 = vmul.f32 %v532_v13, %v526_v3 }
 0x39e   : > { %v315_v17 = vpack.c.bf16 %v314_v14, %v314_v14 }
 0x3a7   : > { %v317_v15 = vpop.permute.xlu0 %316 }
 0x3a8   : > { %v322_v16 = vsel %vm204_vm2, %v317_v15, 0 }
 0x3a9   : > { %331 = vmatpush.bf16.msrb.mxu3 %v322_v16 }
 0x3ab   : > { %v275_v18 = vpop.f32.mrf.mxu3 }
 0x3ac   : > { %489 = vmatmul.msk.bf16.vlgmr.msrb.gmra.mxu3 %vm165_vm0, %v315_v17  ;;  %396 = vrot.lane.b32.xlu2 %v275_v18, %s552_s29 }
 0x3b3   : > { %v277_v19 = vpop.f32.mrf.mxu3  ;;  %v391_v20 = vpop.f32.mrf.mxu2 }
 0x3bb   : > { %v393_v21 = vpop.f32.mrf.mxu2 }
 0x406   : > { %v397_v24 = vpop.permute.xlu2 %396 }
 0x407   : > { %v407_v25 = vsel %vm165_vm0, %v619_v41, %v397_v24 }
 0x42f   : > { %v333_v22 = vpop.f32.mrf.mxu3 }
 0x430   : > { %400 = vrot.lane.b32.xlu1 %v333_v22, %s553_s30 }
 0x437   : > { %v335_v2 = vpop.f32.mrf.mxu3 }
 0x438   : > { %404 = vrot.lane.b32.xlu1 %v391_v20, %s554_s3 }
 0x4a2   : > { %v401_v23 = vpop.permute.xlu1 %400 }
 0x4a3   : > { %v409_v26 = vsel %vm408_vm3, %v407_v25, %v401_v23 }
 0x4aa   : > { %v405_v27 = vpop.permute.xlu1 %404 }
 0x4ab   : > { %v411_v28 = vsel %vm410_vm4, %v409_v26, %v405_v27 }
 0x4ac   : > { %v412_v29 = vpack.c.bf16 %v411_v28, %v411_v28 }
 0x4ae   : > { %414 = vst.msk [vmem:[%s152_s6] sm:$0xf] %vm413_vm5, %v412_v29 }
 0x4af PF: > { %s12_s9 = sadd.s32 1, %s539_s9  }
 0x4b0   : > { %p9_p4 = scmp.ge.s32.totalorder %s12_s9, 4  }
 0x4b2   :  { %11 = sbr.rel (!%p9_p4) target bundleno = 1 (0x1), region = 61 }

// kernel: _lambda_.39
= control target key start
LH: loop header
LB: loop body
LE: loop exit
PB: predicated region body
PF: predicated region fallthrough
CT: control target
= control target key end

     0   :  { %vm25_vm0 = vcmask 261120   ;;  %v239_v11 = vmov 0.0   ;;  %vm173_vm1 = vcmask 257024   ;;  %s320_s1 = inlined_call_operand.vmem [shape: bf16[32,128], index: 1, kind: input, shape index: {}]   ;;  %s321_s3 = inlined_call_operand.vmem [shape: bf16[128,32], index: 3, kind: input, shape index: {}]   ;;  %s322_s2 = inlined_call_operand.vmem [shape: f32[1,128], index: 2, kind: input, shape index: {}]   ;;  %s323_s0 = inlined_call_operand.vmem [shape: bf16[16,32], index: 0, kind: input, shape index: {}]   ;;  %s324_s4 = inlined_call_operand.vmem [shape: f32[1,32], index: 4, kind: input, shape index: {}]   ;;  %s325_s5 = inlined_call_operand.vmem [shape: bf16[16,32], index: 5, kind: output, shape index: {}]  }
   0x1   :  { %v227_v0 = vld [vmem:[%s320_s1 + $0x8] sm:$0xff]  ;;  %v235_v1 = vld [vmem:[%s321_s3 + $0x38] sm:$0xff]  ;;  %v226_v2 = vld [vmem:[%s320_s1] sm:$0xff]  ;;  %26 = vst.msk [vmem:[#allocation2] sm:$0xff] %vm25_vm0, %v239_v11 }
   0x2   :  { %65 = vmatpush.bf16.msra.mxu0 %v227_v0  ;;  %142 = vmatpush.bf16.msra.mxu1 %v235_v1  ;;  %v234_v3 = vld [vmem:[%s321_s3 + $0x30] sm:$0xff]  ;;  %v225_v4 = vld [vmem:[%s323_s0] sm:$0xff]  ;;  %v233_v5 = vld [vmem:[%s321_s3 + $0x28] sm:$0xff]  ;;  %27 = vst.msk [vmem:[#allocation2 + $0x8] sm:$0xff] %vm25_vm0, %v239_v11 }
   0x3   :  { %v232_v6 = vld [vmem:[%s321_s3 + $0x20] sm:$0xff]  ;;  %v231_v7 = vld [vmem:[%s321_s3 + $0x18] sm:$0xff]  ;;  %v230_v8 = vld [vmem:[%s321_s3 + $0x10] sm:$0xff] }
   0x4   :  { %v229_v9 = vld [vmem:[%s321_s3 + $0x8] sm:$0xff]  ;;  %v228_v10 = vld [vmem:[%s321_s3] sm:$0xff] }
   0x5   :  { %v237_v13 = vld [vmem:[%s322_s2] ss:$0 sm:$0xff] }
   0x6   :  { %66 = vmatpush.bf16.msra.mxu0 %v226_v2  ;;  %143 = vmatpush.bf16.msra.mxu1 %v234_v3  ;;  %v238_v24 = vld [vmem:[%s324_s4] ss:$0 sm:$0xff] }
   0x8   :  { %v75_v20 = vld [vmem:[#allocation2] sm:$0xff] }
   0x9   :  { %192 = vmatmul.msk.bf16.vlgmr.msra.gmra.mxu0 %vm25_vm0, %v225_v4  ;;  %v76_v23 = vld [vmem:[#allocation2 + $0x8] sm:$0xff] }
   0xa   :  { %144 = vmatpush.bf16.msra.mxu1 %v233_v5 }
   0xe   :  { %145 = vmatpush.bf16.msra.mxu1 %v232_v6 }
  0x12   :  { %146 = vmatpush.bf16.msra.mxu1 %v231_v7 }
  0x16   :  { %147 = vmatpush.bf16.msra.mxu1 %v230_v8 }
  0x1a   :  { %148 = vmatpush.bf16.msra.mxu1 %v229_v9 }
  0x1e   :  { %149 = vmatpush.bf16.msra.mxu1 %v228_v10 }
  0x86   :  { %v68_v12 = vpop.f32.mrf.mxu0 }
  0x87   :  { %v69_v14 = vadd.f32 %v237_v13, %v68_v12 }
  0x89   :  { %v73_v17 = vmax.f32 %v69_v14, 0.0 }
  0x8e   :  { %v70_v15 = vpop.f32.mrf.mxu0 }
  0x8f   :  { %v71_v16 = vadd.f32 %v237_v13, %v70_v15 }
  0x91   :  { %v74_v18 = vmax.f32 %v71_v16, 0.0 }
  0x93   :  { %v77_v19 = vpack.c.bf16 %v74_v18, %v73_v17 }
  0x95   :  { %150 = vmatmul.bf16.vlgmr.msra.gmra.mxu1 %v77_v19 }
 0x112   :  { %v151_v21 = vpop.f32.mrf.mxu1 }
 0x113   :  { %v156_v22 = vadd.f32 %v151_v21, %v75_v20 }
 0x115   :  { %158 = vst.msk [vmem:[#allocation2] sm:$0xff] %vm25_vm0, %v156_v22 }
 0x11a   :  { %v153_v25 = vpop.f32.mrf.mxu1 }
 0x11b   :  { %v157_v26 = vadd.f32 %v153_v25, %v76_v23 }
 0x11c   :  { %v163_v27 = vld [vmem:[#allocation2] sm:$0xff] }
 0x11d   :  { %v169_v28 = vadd.f32 %v238_v24, %v163_v27  ;;  %159 = vst.msk [vmem:[#allocation2 + $0x8] sm:$0xff] %vm25_vm0, %v157_v26 }
 0x11f   :  { %v171_v29 = vpack.c.bf16 %v169_v28, %v169_v28 }
 0x121   :  { %174 = vst.msk [vmem:[%s325_s5] sm:$0xf] %vm173_vm1, %v171_v29 }
 0x124   :  { %v164_v30 = vld [vmem:[#allocation2 + $0x8] sm:$0xff] }
 0x125   :  { %v170_v31 = vadd.f32 %v238_v24, %v164_v30 }
 0x127   :  { %v172_v32 = vpack.c.bf16 %v170_v31, %v170_v31 }
 0x129   :  { %175 = vst.msk [vmem:[%s325_s5 + $0x4] sm:$0xf] %vm173_vm1, %v172_v32 }

// kernel: _lambda_.48
= control target key start
LH: loop header
LB: loop body
LE: loop exit
PB: predicated region body
PF: predicated region fallthrough
CT: control target
= control target key end

     0   :  { %s587_s9 = smov 0   ;;  %s668_s0 = inlined_call_operand.vmem [shape: bf16[2,8,96], index: 0, kind: input, shape index: {}]   ;;  %s669_s1 = inlined_call_operand.vmem [shape: f32[2,8,1], index: 1, kind: input, shape index: {}]   ;;  %s670_s2 = inlined_call_operand.vmem [shape: bf16[2,8,32], index: 2, kind: output, shape index: {}]  }
   0x1 LB: > { %s491_s10 = sadd.s32 4294967295, %s555_s9   ;;  %p495_p0 = scmp.ge.s32.totalorder %s555_s9, 1  ;;  %s555_s9 = sphi %s587_s9, %s12_s9  }
   0x2   : > { %p120_p1 = scmp.lt.s32.totalorder %s555_s9, 3 }
   0x4   : > { %p121_p2 = pnand %p495_p0, %p120_p1 }
   0x5   : > { %p144_p3 = scmp.lt.s32.totalorder (!%p121_p2), %s491_s10, 1  ;;  %s557_s15 = smov (!%p121_p2), 96  }
   0x6   : > { %124 = sbr.rel (%p121_p2) target bundleno = 1181 (0x49d), region = 28  ;;  %s559_s20 = smov (!%p121_p2), 120  }
   0x7   : > { %s560_s21 = smov (!%p121_p2), 64   ;;  %s561_s22 = smov (!%p121_p2), 80  }
   0x8   : > { %s562_s23 = smov (!%p121_p2), 104   ;;  %s563_s24 = smov (!%p121_p2), 88  }
   0x9   : > { %s564_s25 = smov (!%p121_p2), 112   ;;  %s565_s26 = smov (!%p121_p2), 72  }
   0xa   : > { %s566_s27 = smov (!%p121_p2), 56   ;;  %s567_s28 = smov (!%p121_p2), 40  }
   0xb   : > { %s674_s10 = smov (!%p144_p3, %s491_s10), 1  ;;  %v558_v4 = vmov 0   ;;  %vm176_vm0 = vcmask 64512   ;;  %v165_v7 = vlaneseq  ;;  %vm215_vm4 = vcmask 1043456   ;;  %s568_s29 = smov 48  }
   0xc   : > { %s496_s11 = sshll.u32 %s674_s10, 2  ;;  %s497_s16 = sshll.u32 %s674_s10, 3  ;;  %532 = vset.pattern.permute.xlu0 %v558_v4  ;;  %vm419_vm5 = vcmask 130048   ;;  %vm421_vm6 = vcmask 195584   ;;  %vm424_vm7 = vcmask 257024  }
   0xd   : > { %s147_s14 = scalar_lea.vmem %s668_s0, %s496_s11  ;;  %s151_s19 = scalar_lea.vmem %s669_s1, %s497_s16  ;;  %v166_v8 = vshrl.u32 %v165_v7, 7  ;;  %v168_v9 = vand.u32 127, %v165_v7 }
   0xe   : > { %v157_v0 = vld [vmem:[%s147_s14] sm:$0xf]  ;;  %s569_s30 = smov 8   ;;  %s570_s3 = smov 16  }
   0xf   : > { %v172_v1 = vunpack.c.l.b16 %v157_v0  ;;  %v158_v3 = vld [vmem:[%s151_s19] sm:$0xff]  ;;  %vm169_vm1 = vcmp.ge.s32.totalorder %v166_v8, %v168_v9  ;;  %s571_s4 = smov 24   ;;  %s155_s7 = scalar_lea.vmem %s670_s2, %s496_s11 }
  0x11   : > { %v603_v2 = vpack.c.b16 %v172_v1, %v172_v1 }
  0x13   : > { %174 = vrot.lane.b32.xlu0 %v603_v2, %s557_s15  ;;  %232 = vrot.lane.b32.xlu2 %v603_v2, %s559_s20 }
  0x1b   : > { %161 = vperm.xlu0 %532, %v158_v3  }
  0x23   : > { %210 = vrot.lane.b32.xlu0 %v603_v2, %s560_s21 }
  0x2b   : > { %292 = vrot.lane.b32.xlu0 %v603_v2, %s561_s22 }
  0x33   : > { %348 = vrot.lane.b32.xlu0 %v603_v2, %s562_s23 }
  0x6d   : > { %v233_v24 = vpop.permute.xlu2 %232 }
  0x85   : > { %v175_v5 = vpop.permute.xlu0 %174 }
  0x86   : > { %v181_v6 = vsel %vm176_vm0, %v175_v5, 0 }
  0x87   : > { %190 = vmatpush.bf16.xpose.msra.mxu0 %v181_v6 }
  0x8d   : > { %v162_v10 = vpop.permute.xlu0 %161 }
  0x8e   : > { %499 = vmatmul.msk.bf16.vlgmr.msra.gmra.mxu0 %vm176_vm0, %v157_v0  ;;  %vm164_vm2 = vcmp.gt.f32.partialorder %v162_v10, 0.0 }
  0x8f   : > { %vm613_vm3 = vmand %vm164_vm2, %vm169_vm1 }
  0x95   : > { %v211_v25 = vpop.permute.xlu0 %210 }
  0x96   : > { %v217_v26 = vsel %vm215_vm4, %v211_v25, 0 }
  0x97   : > { %226 = vmatpush.bf16.msra.mxu1 %v217_v26 }
  0x9d   : > { %v293_v27 = vpop.permute.xlu0 %292 }
  0x9e   : > { %v298_v28 = vsel %vm176_vm0, %v293_v27, 0 }
  0x9f   : > { %307 = vmatpush.bf16.xpose.msrb.mxu1 %v298_v28 }
  0xa5   : > { %v349_v35 = vpop.permute.xlu0 %348 }
 0x10b   : > { %v192_v11 = vpop.f32.mrf.mxu0 }
 0x10c   : > { %v196_v13 = vmul.f32 0.35355338, %v192_v11 }
 0x10e   : > { %v197_v14 = vsel %vm613_vm3, %v196_v13, -10000.0 }
 0x10f   : > { %v198_v15 = vsel %vm176_vm0, %v197_v14, -inf }
 0x110   : > { %199 = vmax.xlane.f32.xlu1 %v198_v15 }
 0x113   : > { %v194_v16 = vpop.f32.mrf.mxu0 }
 0x129   : > { %234 = vrot.lane.b32.xlu1 %v603_v2, %s563_s24 }
 0x131   : > { %290 = vrot.lane.b32.xlu1 %v603_v2, %s564_s25 }
 0x183   : > { %v200_v17 = vpop.xlane.xlu1 %199 }
 0x184   : > { %v201_v18 = vsub.f32 %v197_v14, %v200_v17 }
 0x186   : > { %v202_v19 = vmul.f32 1.442695, %v201_v18 }
 0x188   : > { %533 = vpow2.f32 %v202_v19 }
 0x18e   : > { %v534_v20 = vpop.eup %533 }
 0x18f   : > { %v204_v21 = vsel %vm176_vm0, %v534_v20, 0.0 }
 0x190   : > { %205 = vadd.xlane.f32.xlu2 %v204_v21 }
 0x19b   : > { %v235_v22 = vpop.permute.xlu1 %234 }
 0x19c   : > { %v240_v23 = vsel %vm176_vm0, %v235_v22, 0 }
 0x19d   : > { %249 = vmatpush.bf16.xpose.msra.mxu2 %v240_v23 }
 0x1a3   : > { %v291_v36 = vpop.permute.xlu1 %290 }
 0x1a4   : > { %501 = vmatmul.msk.bf16.vlgmr.msra.gmra.mxu2 %vm176_vm0, %v233_v24 }
 0x1a8   : > { %350 = vrot.lane.b32.xlu2 %v603_v2, %s565_s26 }
 0x203   : > { %v206_v29 = vpop.xlane.xlu2 %205 }
 0x204   : > { %535 = vrcp.f32 %v206_v29 }
 0x20a   : > { %v536_v30 = vpop.eup %535 }
 0x20b   : > { %v351_v31 = vpop.permute.xlu2 %350  ;;  %v208_v32 = vmul.f32 %v536_v30, %v534_v20 }
 0x20c   : > { %v356_v33 = vsel %vm176_vm0, %v351_v31, 0 }
 0x20d   : > { %365 = vmatpush.bf16.xpose.msrb.mxu0 %v356_v33  ;;  %v209_v34 = vpack.c.bf16 %v208_v32, %v208_v32 }
 0x20f   : > { %500 = vmatmul.msk.bf16.vlgmr.msra.gmra.mxu1 %vm176_vm0, %v209_v34 }
 0x214   : > { %505 = vmatmul.msk.bf16.vlgmr.msrb.gmra.mxu0 %vm176_vm0, %v349_v35 }
 0x21f   : > { %503 = vmatmul.msk.bf16.vlgmr.msrb.gmra.mxu1 %vm176_vm0, %v291_v36 }
 0x227   : > { %v251_v37 = vpop.f32.mrf.mxu2 }
 0x228   : > { %v255_v38 = vmul.f32 0.35355338, %v251_v37 }
 0x22a   : > { %v256_v39 = vsel %vm613_vm3, %v255_v38, -10000.0 }
 0x22b   : > { %v257_v40 = vsel %vm176_vm0, %v256_v39, -inf }
 0x22c   : > { %258 = vmax.xlane.f32.xlu2 %v257_v40 }
 0x22f   : > { %v253_v41 = vpop.f32.mrf.mxu2 }
 0x28c   : > { %v638_v42 = vpop.f32.mrf.mxu1 }
 0x291   : > { %v367_v43 = vpop.f32.mrf.mxu0 }
 0x292   : > { %v371_v44 = vmul.f32 0.35355338, %v367_v43 }
 0x294   : > { %v230_v45 = vpop.f32.mrf.mxu1  ;;  %v372_v46 = vsel %vm613_vm3, %v371_v44, -10000.0 }
 0x295   : > { %v373_v47 = vsel %vm176_vm0, %v372_v46, -inf }
 0x296   : > { %374 = vmax.xlane.f32.xlu0 %v373_v47 }
 0x299   : > { %v369_v48 = vpop.f32.mrf.mxu0 }
 0x29c   : > { %v309_v49 = vpop.f32.mrf.mxu1 }
 0x29d   : > { %v313_v50 = vmul.f32 0.35355338, %v309_v49 }
 0x29f   : > { %v259_v51 = vpop.xlane.xlu2 %258  ;;  %v314_v52 = vsel %vm613_vm3, %v313_v50, -10000.0 }
 0x2a0   : > { %v260_v53 = vsub.f32 %v256_v39, %v259_v51  ;;  %v315_v54 = vsel %vm176_vm0, %v314_v52, -inf }
 0x2a1   : > { %316 = vmax.xlane.f32.xlu1 %v315_v54 }
 0x2a2   : > { %v261_v55 = vmul.f32 1.442695, %v260_v53 }
 0x2a4   : > { %537 = vpow2.f32 %v261_v55  ;;  %v311_v56 = vpop.f32.mrf.mxu1 }
 0x2aa   : > { %v538_v57 = vpop.eup %537 }
 0x2ab   : > { %v263_v58 = vsel %vm176_vm0, %v538_v57, 0.0 }
 0x2ac   : > { %264 = vadd.xlane.f32.xlu2 %v263_v58 }
 0x2ba   : > { %269 = vrot.lane.b32.xlu1 %v603_v2, %s566_s27 }
 0x309   : > { %v375_v59 = vpop.xlane.xlu0 %374 }
 0x30a   : > { %v376_v60 = vsub.f32 %v372_v46, %v375_v59 }
 0x30c   : > { %v377_v61 = vmul.f32 1.442695, %v376_v60 }
 0x30e   : > { %539 = vpow2.f32 %v377_v61 }
 0x314   : > { %v540_v62 = vpop.eup %539  ;;  %v317_v63 = vpop.xlane.xlu1 %316 }
 0x315   : > { %v318_v0 = vsub.f32 %v314_v52, %v317_v63  ;;  %v379_v1 = vsel %vm176_vm0, %v540_v62, 0.0 }
 0x316   : > { %380 = vadd.xlane.f32.xlu0 %v379_v1 }
 0x317   : > { %v319_v3 = vmul.f32 1.442695, %v318_v0 }
 0x319   : > { %541 = vpow2.f32 %v319_v3 }
 0x31f   : > { %v542_v4 = vpop.eup %541  ;;  %v265_v5 = vpop.xlane.xlu2 %264 }
 0x320   : > { %v321_v6 = vsel %vm176_vm0, %v542_v4, 0.0  ;;  %543 = vrcp.f32 %v265_v5 }
 0x321   : > { %322 = vadd.xlane.f32.xlu2 %v321_v6 }
 0x326   : > { %v544_v7 = vpop.eup %543 }
 0x327   : > { %v267_v8 = vmul.f32 %v544_v7, %v538_v57 }
 0x329   : > { %v268_v11 = vpack.c.bf16 %v267_v8, %v267_v8 }
 0x32a   : > { %385 = vrot.lane.b32.xlu0 %v603_v2, %s567_s28 }
 0x32c   : > { %v270_v9 = vpop.permute.xlu1 %269 }
 0x32d   : > { %v275_v10 = vsel %vm215_vm4, %v270_v9, 0 }
 0x32e   : > { %284 = vmatpush.bf16.msra.mxu3 %v275_v10 }
 0x331   : > { %502 = vmatmul.msk.bf16.vlgmr.msra.gmra.mxu3 %vm176_vm0, %v268_v11 }
 0x339   : > { %327 = vrot.lane.b32.xlu2 %v603_v2, %s568_s29 }
 0x389   : > { %v381_v12 = vpop.xlane.xlu0 %380 }
 0x38a   : > { %545 = vrcp.f32 %v381_v12 }
 0x390   : > { %v546_v14 = vpop.eup %545 }
 0x391   : > { %v383_v16 = vmul.f32 %v546_v14, %v540_v62 }
 0x393   : > { %v384_v23 = vpack.c.bf16 %v383_v16, %v383_v16 }
 0x394   : > { %v323_v13 = vpop.xlane.xlu2 %322 }
 0x395   : > { %547 = vrcp.f32 %v323_v13 }
 0x39b   : > { %v548_v15 = vpop.eup %547 }
 0x39c   : > { %v325_v17 = vmul.f32 %v548_v15, %v542_v4  ;;  %v328_v18 = vpop.permute.xlu2 %327  ;;  %v386_v19 = vpop.permute.xlu0 %385 }
 0x39d   : > { %v333_v20 = vsel %vm215_vm4, %v328_v18, 0  ;;  %v391_v21 = vsel %vm215_vm4, %v386_v19, 0 }
 0x39e   : > { %342 = vmatpush.bf16.msrb.mxu3 %v333_v20  ;;  %400 = vmatpush.bf16.msrb.mxu2 %v391_v21  ;;  %v326_v22 = vpack.c.bf16 %v325_v17, %v325_v17 }
 0x3a1   : > { %504 = vmatmul.msk.bf16.vlgmr.msrb.gmra.mxu3 %vm176_vm0, %v326_v22  ;;  %506 = vmatmul.msk.bf16.vlgmr.msrb.gmra.mxu2 %vm176_vm0, %v384_v23 }
 0x3b4   : > { %v286_v2 = vpop.f32.mrf.mxu3 }
 0x3b5   : > { %407 = vrot.lane.b32.xlu1 %v286_v2, %s569_s30 }
 0x3bc   : > { %v288_v24 = vpop.f32.mrf.mxu3 }
 0x424   : > { %v344_v25 = vpop.f32.mrf.mxu3  ;;  %v402_v26 = vpop.f32.mrf.mxu2 }
 0x425   : > { %411 = vrot.lane.b32.xlu1 %v344_v25, %s570_s3  ;;  %415 = vrot.lane.b32.xlu0 %v402_v26, %s571_s4 }
 0x427   : > { %v408_v29 = vpop.permute.xlu1 %407 }
 0x428   : > { %v418_v30 = vsel %vm176_vm0, %v638_v42, %v408_v29 }
 0x42c   : > { %v346_v27 = vpop.f32.mrf.mxu3  ;;  %v404_v28 = vpop.f32.mrf.mxu2 }
 0x497   : > { %v412_v31 = vpop.permute.xlu1 %411  ;;  %v416_v32 = vpop.permute.xlu0 %415 }
 0x498   : > { %v420_v33 = vsel %vm419_vm5, %v418_v30, %v412_v31 }
 0x499   : > { %v422_v34 = vsel %vm421_vm6, %v420_v33, %v416_v32 }
 0x49a   : > { %v423_v35 = vpack.c.bf16 %v422_v34, %v422_v34 }
 0x49c   : > { %425 = vst.msk [vmem:[%s155_s7] sm:$0xf] %vm424_vm7, %v423_v35 }
 0x49d PF: > { %s12_s9 = sadd.s32 1, %s555_s9  }
 0x49e   : > { %p9_p4 = scmp.ge.s32.totalorder %s12_s9, 4  }
 0x4a0   :  { %11 = sbr.rel (!%p9_p4) target bundleno = 1 (0x1), region = 61 }

// kernel: _lambda_.69
= control target key start
LH: loop header
LB: loop body
LE: loop exit
PB: predicated region body
PF: predicated region fallthrough
CT: control target
= control target key end

     0   :  { %s231_s1 = inlined_call_operand.vmem [shape: bf16[128,128], index: 1, kind: input, shape index: {}]   ;;  %s232_s2 = inlined_call_operand.vmem [shape: f32[1,128], index: 2, kind: input, shape index: {}]   ;;  %s233_s0 = inlined_call_operand.vmem [shape: bf16[16,128], index: 0, kind: input, shape index: {}]   ;;  %s234_s3 = inlined_call_operand.vmem [shape: f32[16,128], index: 3, kind: output, shape index: {}]  }
   0x1   :  { %v173_v0 = vld [vmem:[%s231_s1 + $0x38] sm:$0xff]  ;;  %v172_v1 = vld [vmem:[%s231_s1 + $0x30] sm:$0xff]  ;;  %v171_v2 = vld [vmem:[%s231_s1 + $0x28] sm:$0xff] }
   0x2   :  { %94 = vmatpush.bf16.msra.mxu0 %v173_v0  ;;  %v170_v3 = vld [vmem:[%s231_s1 + $0x20] sm:$0xff]  ;;  %v169_v4 = vld [vmem:[%s231_s1 + $0x18] sm:$0xff]  ;;  %v168_v5 = vld [vmem:[%s231_s1 + $0x10] sm:$0xff] }
   0x3   :  { %v167_v6 = vld [vmem:[%s231_s1 + $0x8] sm:$0xff]  ;;  %v166_v7 = vld [vmem:[%s231_s1] sm:$0xff] }
   0x4   :  { %v165_v8 = vld [vmem:[%s233_s0] sm:$0xff] }
   0x5   :  { %v174_v9 = vld [vmem:[%s232_s2] ss:$0 sm:$0xff] }
   0x6   :  { %95 = vmatpush.bf16.msra.mxu0 %v172_v1 }
   0xa   :  { %96 = vmatpush.bf16.msra.mxu0 %v171_v2 }
   0xe   :  { %97 = vmatpush.bf16.msra.mxu0 %v170_v3 }
  0x12   :  { %98 = vmatpush.bf16.msra.mxu0 %v169_v4 }
  0x16   :  { %99 = vmatpush.bf16.msra.mxu0 %v168_v5 }
  0x1a   :  { %100 = vmatpush.bf16.msra.mxu0 %v167_v6 }
  0x1e   :  { %101 = vmatpush.bf16.msra.mxu0 %v166_v7 }
  0x21   :  { %102 = vmatmul.bf16.vlgmr.msra.gmra.mxu0 %v165_v8 }
  0x9e   :  { %v103_v10 = vpop.f32.mrf.mxu0 }
  0x9f   :  { %v121_v11 = vadd.f32 %v174_v9, %v103_v10 }
  0xa1   :  { %123 = vst [vmem:[%s234_s3] sm:$0xff] %v121_v11 }
  0xa6   :  { %v105_v12 = vpop.f32.mrf.mxu0 }
  0xa7   :  { %v122_v13 = vadd.f32 %v174_v9, %v105_v12 }
  0xa9   :  { %124 = vst [vmem:[%s234_s3 + $0x8] sm:$0xff] %v122_v13 }

// kernel: _lambda_.53
= control target key start
LH: loop header
LB: loop body
LE: loop exit
PB: predicated region body
PF: predicated region fallthrough
CT: control target
= control target key end

     0   :  { %s626_s12 = smov 0   ;;  %s695_s0 = inlined_call_operand.vmem [shape: bf16[2,8,32], index: 0, kind: input, shape index: {}]   ;;  %s696_s1 = inlined_call_operand.vmem [shape: bf16[2,8,64], index: 1, kind: input, shape index: {}]   ;;  %s697_s2 = inlined_call_operand.vmem [shape: f32[2,1,8], index: 2, kind: input, shape index: {}]   ;;  %s698_s3 = inlined_call_operand.vmem [shape: bf16[2,8,32], index: 3, kind: output, shape index: {}]  }
   0x1 LB: > { %s535_s13 = sadd.s32 4294967295, %s594_s12   ;;  %p539_p0 = scmp.ge.s32.totalorder %s594_s12, 1  ;;  %s594_s12 = sphi %s626_s12, %s13_s12  }
   0x2   : > { %p153_p1 = scmp.lt.s32.totalorder %s594_s12, 3 }
   0x4   : > { %p154_p2 = pnand %p539_p0, %p153_p1 }
   0x5   : > { %p182_p3 = scmp.lt.s32.totalorder (!%p154_p2), %s535_s13, 1  ;;  %s596_s24 = smov (!%p154_p2), 96  }
   0x6   : > { %157 = sbr.rel (%p154_p2) target bundleno = 1080 (0x438), region = 32  ;;  %s597_s25 = smov (!%p154_p2), 112  }
   0x7   : > { %s598_s26 = smov (!%p154_p2), 104   ;;  %s599_s27 = smov (!%p154_p2), 120  }
   0x8   : > { %s600_s28 = smov (!%p154_p2), 88   ;;  %s601_s29 = smov (!%p154_p2), 80  }
   0x9   : > { %s602_s30 = smov (!%p154_p2), 72   ;;  %s603_s4 = smov (!%p154_p2), 8  }
   0xa   : > { %s604_s5 = smov (!%p154_p2), 24   ;;  %s605_s6 = smov (!%p154_p2), 16  }
   0xb   : > { %s700_s13 = smov (!%p182_p3, %s535_s13), 1  ;;  %vm205_vm0 = vcmask 64512   ;;  %vm247_vm2 = vcmask 1043456   ;;  %vm454_vm3 = vcmask 130048   ;;  %vm456_vm4 = vcmask 195584  }
   0xc   : > { %s634_s14 = sshll.u32 %s700_s13, 2  ;;  %s192_s23 = scalar_lea.vmem %s697_s2, %s700_s13  ;;  %vm459_vm5 = vcmask 257024  }
   0xd   : > { %s189_s17 = scalar_lea.vmem %s696_s1, %s634_s14  ;;  %s185_s20 = scalar_lea.vmem %s695_s0, %s634_s14  ;;  %v571_v7 = vld [vmem:[%s192_s23] ss:$0 sm:$0xff] }
   0xe   : > { %v199_v0 = vld [vmem:[%s189_s17] sm:$0xf]  ;;  %vm204_vm1 = vcmp.gt.f32.partialorder %v571_v7, 0.0  ;;  %s196_s9 = scalar_lea.vmem %s698_s3, %s634_s14 }
   0xf   : > { %v210_v1 = vsel %vm205_vm0, %v199_v0, 0  ;;  %v198_v2 = vld [vmem:[%s185_s20] sm:$0xf]  ;;  %v240_v3 = vunpack.c.l.b16 %v199_v0 }
  0x10   : > { %219 = vmatpush.bf16.xpose.msra.mxu0 %v210_v1  ;;  %v265_v5 = vunpack.c.l.b16 %v198_v2 }
  0x11   : > { %v649_v4 = vpack.c.b16 %v240_v3, %v240_v3 }
  0x12   : > { %v266_v6 = vpack.c.b16 %v265_v5, %v265_v5 }
  0x13   : > { %242 = vrot.lane.b32.xlu2 %v649_v4, %s596_s24 }
  0x17   : > { %543 = vmatmul.msk.bf16.vlgmr.msra.gmra.mxu0 %vm205_vm0, %v198_v2 }
  0x1b   : > { %327 = vrot.lane.b32.xlu2 %v649_v4, %s597_s25 }
  0x23   : > { %385 = vrot.lane.b32.xlu2 %v649_v4, %s598_s26 }
  0x2b   : > { %325 = vrot.lane.b32.xlu2 %v266_v6, %s597_s25 }
  0x6d   : > { %v243_v13 = vpop.permute.xlu2 %242 }
  0x6e   : > { %v249_v24 = vsel %vm247_vm2, %v243_v13, 0 }
  0x6f   : > { %258 = vmatpush.bf16.msra.mxu1 %v249_v24 }
  0x75   : > { %v328_v14 = vpop.permute.xlu2 %327 }
  0x76   : > { %v333_v25 = vsel %vm205_vm0, %v328_v14, 0 }
  0x77   : > { %342 = vmatpush.bf16.xpose.msrb.mxu1 %v333_v25 }
  0x7d   : > { %v386_v18 = vpop.permute.xlu2 %385 }
  0x7e   : > { %v391_v19 = vsel %vm205_vm0, %v386_v18, 0 }
  0x7f   : > { %400 = vmatpush.bf16.xpose.msrb.mxu0 %v391_v19 }
  0x85   : > { %v326_v32 = vpop.permute.xlu2 %325 }
  0x94   : > { %v221_v8 = vpop.f32.mrf.mxu0 }
  0x95   : > { %v225_v9 = vmul.f32 0.35355338, %v221_v8 }
  0x97   : > { %v226_v10 = vsel %vm204_vm1, %v225_v9, -10000.0 }
  0x98   : > { %v227_v11 = vsel %vm205_vm0, %v226_v10, -inf }
  0x99   : > { %228 = vmax.xlane.f32.xlu0 %v227_v11 }
  0x9c   : > { %v223_v12 = vpop.f32.mrf.mxu0 }
  0xad   : > { %269 = vrot.lane.b32.xlu0 %v649_v4, %s599_s27 }
  0xb5   : > { %383 = vrot.lane.b32.xlu0 %v266_v6, %s598_s26 }
 0x10c   : > { %v229_v15 = vpop.xlane.xlu0 %228 }
 0x10d   : > { %v230_v16 = vsub.f32 %v226_v10, %v229_v15 }
 0x10f   : > { %v231_v17 = vmul.f32 1.442695, %v230_v16 }
 0x111   : > { %572 = vpow2.f32 %v231_v17 }
 0x117   : > { %v573_v20 = vpop.eup %572 }
 0x118   : > { %v233_v21 = vsel %vm205_vm0, %v573_v20, 0.0 }
 0x119   : > { %234 = vadd.xlane.f32.xlu1 %v233_v21 }
 0x11f   : > { %v270_v22 = vpop.permute.xlu0 %269 }
 0x120   : > { %v275_v26 = vsel %vm205_vm0, %v270_v22, 0 }
 0x121   : > { %284 = vmatpush.bf16.xpose.msra.mxu2 %v275_v26 }
 0x127   : > { %v384_v23 = vpop.permute.xlu0 %383 }
 0x128   : > { %549 = vmatmul.msk.bf16.vlgmr.msrb.gmra.mxu0 %vm205_vm0, %v384_v23 }
 0x132   : > { %267 = vrot.lane.b32.xlu1 %v266_v6, %s599_s27 }
 0x18c   : > { %v235_v27 = vpop.xlane.xlu1 %234 }
 0x18d   : > { %574 = vrcp.f32 %v235_v27 }
 0x193   : > { %v575_v28 = vpop.eup %574 }
 0x194   : > { %v237_v29 = vmul.f32 %v575_v28, %v573_v20 }
 0x196   : > { %v238_v30 = vpack.c.bf16 %v237_v29, %v237_v29 }
 0x198   : > { %544 = vmatmul.msk.bf16.vlgmr.msra.gmra.mxu1 %vm205_vm0, %v238_v30 }
 0x1a4   : > { %v268_v31 = vpop.permute.xlu1 %267 }
 0x1a5   : > { %545 = vmatmul.msk.bf16.vlgmr.msra.gmra.mxu2 %vm205_vm0, %v268_v31  ;;  %v402_v33 = vpop.f32.mrf.mxu0 }
 0x1a6   : > { %v406_v34 = vmul.f32 0.35355338, %v402_v33 }
 0x1a8   : > { %547 = vmatmul.msk.bf16.vlgmr.msrb.gmra.mxu1 %vm205_vm0, %v326_v32  ;;  %v407_v35 = vsel %vm204_vm1, %v406_v34, -10000.0 }
 0x1a9   : > { %v408_v36 = vsel %vm205_vm0, %v407_v35, -inf }
 0x1aa   : > { %409 = vmax.xlane.f32.xlu0 %v408_v36 }
 0x1ad   : > { %v404_v37 = vpop.f32.mrf.mxu0 }
 0x215   : > { %v668_v38 = vpop.f32.mrf.mxu1 }
 0x21d   : > { %v262_v39 = vpop.f32.mrf.mxu1  ;;  %v410_v52 = vpop.xlane.xlu0 %409 }
 0x21e   : > { %v411_v56 = vsub.f32 %v407_v35, %v410_v52 }
 0x220   : > { %v412_v58 = vmul.f32 1.442695, %v411_v56 }
 0x225   : > { %v344_v40 = vpop.f32.mrf.mxu1 }
 0x226   : > { %v348_v41 = vmul.f32 0.35355338, %v344_v40 }
 0x228   : > { %v286_v42 = vpop.f32.mrf.mxu2  ;;  %v349_v43 = vsel %vm204_vm1, %v348_v41, -10000.0 }
 0x229   : > { %v290_v44 = vmul.f32 0.35355338, %v286_v42  ;;  %v350_v45 = vsel %vm205_vm0, %v349_v43, -inf }
 0x22a   : > { %351 = vmax.xlane.f32.xlu1 %v350_v45 }
 0x22b   : > { %v291_v46 = vsel %vm204_vm1, %v290_v44, -10000.0 }
 0x22c   : > { %v292_v47 = vsel %vm205_vm0, %v291_v46, -inf }
 0x22d   : > { %v346_v48 = vpop.f32.mrf.mxu1  ;;  %293 = vmax.xlane.f32.xlu2 %v292_v47 }
 0x230   : > { %v288_v49 = vpop.f32.mrf.mxu2 }
 0x243   : > { %304 = vrot.lane.b32.xlu1 %v649_v4, %s600_s28 }
 0x29d   : > { %v352_v50 = vpop.xlane.xlu1 %351 }
 0x29e   : > { %v353_v51 = vsub.f32 %v349_v43, %v352_v50 }
 0x2a0   : > { %v354_v53 = vmul.f32 1.442695, %v353_v51  ;;  %v294_v54 = vpop.xlane.xlu2 %293 }
 0x2a1   : > { %v295_v55 = vsub.f32 %v291_v46, %v294_v54 }
 0x2a2   : > { %576 = vpow2.f32 %v354_v53 }
 0x2a3   : > { %v296_v57 = vmul.f32 1.442695, %v295_v55 }
 0x2a5   : > { %578 = vpow2.f32 %v296_v57 }
 0x2a6   : > { %580 = vpow2.f32 %v412_v58 }
 0x2a8   : > { %v577_v59 = vpop.eup %576 }
 0x2a9   : > { %v356_v60 = vsel %vm205_vm0, %v577_v59, 0.0 }
 0x2aa   : > { %357 = vadd.xlane.f32.xlu0 %v356_v60 }
 0x2ab   : > { %v579_v61 = vpop.eup %578 }
 0x2ac   : > { %v298_v62 = vsel %vm205_vm0, %v579_v61, 0.0  ;;  %v581_v63 = vpop.eup %580 }
 0x2ad   : > { %299 = vadd.xlane.f32.xlu2 %v298_v62  ;;  %v414_v0 = vsel %vm205_vm0, %v581_v63, 0.0 }
 0x2b5   : > { %415 = vadd.xlane.f32.xlu2 %v414_v0  ;;  %v305_v1 = vpop.permute.xlu1 %304 }
 0x2b6   : > { %v310_v2 = vsel %vm247_vm2, %v305_v1, 0 }
 0x2b7   : > { %319 = vmatpush.bf16.msra.mxu3 %v310_v2 }
 0x2be   : > { %362 = vrot.lane.b32.xlu0 %v649_v4, %s601_s29 }
 0x2cd   : > { %420 = vrot.lane.b32.xlu2 %v649_v4, %s602_s30 }
 0x31d   : > { %v358_v6 = vpop.xlane.xlu0 %357 }
 0x320   : > { %v300_v3 = vpop.xlane.xlu2 %299 }
 0x321   : > { %582 = vrcp.f32 %v300_v3 }
 0x327   : > { %v583_v5 = vpop.eup %582 }
 0x328   : > { %v416_v7 = vpop.xlane.xlu2 %415  ;;  %v302_v8 = vmul.f32 %v583_v5, %v579_v61 }
 0x329   : > { %584 = vrcp.f32 %v416_v7 }
 0x32a   : > { %v303_v9 = vpack.c.bf16 %v302_v8, %v302_v8  ;;  %586 = vrcp.f32 %v358_v6 }
 0x32c   : > { %546 = vmatmul.msk.bf16.vlgmr.msra.gmra.mxu3 %vm205_vm0, %v303_v9 }
 0x32f   : > { %v585_v10 = vpop.eup %584 }
 0x330   : > { %v418_v11 = vmul.f32 %v585_v10, %v581_v63  ;;  %v421_v12 = vpop.permute.xlu2 %420  ;;  %v363_v13 = vpop.permute.xlu0 %362 }
 0x331   : > { %v368_v4 = vsel %vm247_vm2, %v363_v13, 0  ;;  %v426_v14 = vsel %vm247_vm2, %v421_v12, 0  ;;  %v587_v16 = vpop.eup %586 }
 0x332   : > { %377 = vmatpush.bf16.msrb.mxu3 %v368_v4  ;;  %435 = vmatpush.bf16.msrb.mxu2 %v426_v14  ;;  %v419_v15 = vpack.c.bf16 %v418_v11, %v418_v11  ;;  %v360_v17 = vmul.f32 %v587_v16, %v577_v59 }
 0x334   : > { %v361_v18 = vpack.c.bf16 %v360_v17, %v360_v17 }
 0x335   : > { %550 = vmatmul.msk.bf16.vlgmr.msrb.gmra.mxu2 %vm205_vm0, %v419_v15 }
 0x33c   : > { %548 = vmatmul.msk.bf16.vlgmr.msrb.gmra.mxu3 %vm205_vm0, %v361_v18 }
 0x3af   : > { %v321_v19 = vpop.f32.mrf.mxu3 }
 0x3b0   : > { %442 = vrot.lane.b32.xlu1 %v321_v19, %s603_s4 }
 0x3b7   : > { %v323_v20 = vpop.f32.mrf.mxu3 }
 0x3b8   : > { %v437_v21 = vpop.f32.mrf.mxu2 }
 0x3b9   : > { %450 = vrot.lane.b32.xlu1 %v437_v21, %s604_s5 }
 0x3bf   : > { %v379_v22 = vpop.f32.mrf.mxu3 }
 0x3c0   : > { %v439_v23 = vpop.f32.mrf.mxu2  ;;  %446 = vrot.lane.b32.xlu0 %v379_v22, %s605_s6 }
 0x3c7   : > { %v381_v24 = vpop.f32.mrf.mxu3 }
 0x422   : > { %v443_v25 = vpop.permute.xlu1 %442 }
 0x423   : > { %v453_v26 = vsel %vm205_vm0, %v668_v38, %v443_v25 }
 0x42b   : > { %v451_v28 = vpop.permute.xlu1 %450 }
 0x432   : > { %v447_v27 = vpop.permute.xlu0 %446 }
 0x433   : > { %v455_v29 = vsel %vm454_vm3, %v453_v26, %v447_v27 }
 0x434   : > { %v457_v30 = vsel %vm456_vm4, %v455_v29, %v451_v28 }
 0x435   : > { %v458_v31 = vpack.c.bf16 %v457_v30, %v457_v30 }
 0x437   : > { %460 = vst.msk [vmem:[%s196_s9] sm:$0xf] %vm459_vm5, %v458_v31 }
 0x438 PF: > { %s13_s12 = sadd.s32 1, %s594_s12  }
 0x439   : > { %p10_p4 = scmp.ge.s32.totalorder %s13_s12, 4  }
 0x43b   :  { %12 = sbr.rel (!%p10_p4) target bundleno = 1 (0x1), region = 68 }

</bundles_post_ra>
